<compile_context>
chip_gen: v7x
topology: tpu7x:2x2x1
jax: 0.10.0
libtpu: 0.0.40
codegen_flags: <defaults>
</compile_context>

<pallas_src>
import functools

import jax
import jax.numpy as jnp
from jax import lax
from jax.experimental import pallas as pl
from jax.experimental.pallas import tpu as pltpu

K = 5      # conv kernel size
PAD = 2    # "same" padding for 5x5, stride 1


def _resblock_kernel(w1_ref, b1_ref, w2_ref, b2_ref, mask_ref, x_ref,
                     o_ref, s_ref, *, W):
    """One grid step processes nb images (lane axis L = nb*H*W).

    VMEM refs:
      w1_ref, w2_ref : (Cp, K*K*Cp)  folded conv weights (BN scale included)
      b1_ref, b2_ref : (Cp, 1)       folded BN bias
      mask_ref       : (K*K, L)      per-tap boundary masks (0/1, f32)
      x_ref, o_ref   : (Cp, L)       activations (lane-dense)
      s_ref          : (K*K*Cp, L)   im2col scratch
    """
    Cp, L = x_ref.shape
    x = x_ref[...]

    def im2col(inp):
        # Rows [t*Cp, (t+1)*Cp) of the scratch = activation shifted by tap t,
        # zeroed outside the image (reproduces zero padding; also kills
        # cross-image wrap since several images share the lane axis).
        for dy in range(K):
            for dx in range(K):
                t = dy * K + dx
                off = (dy - PAD) * W + (dx - PAD)
                s = inp if off == 0 else pltpu.roll(inp, shift=(-off) % L, axis=1)
                m = mask_ref[pl.ds(t, 1), :]              # (1, L) boundary mask
                s_ref[t * Cp:(t + 1) * Cp, :] = s * m

    def conv(w_ref, b_ref):
        # Single MXU matmul over the tap-stacked contraction (depth K*K*Cp).
        # DEFAULT precision = native single bf16 pass on the MXU, f32 accum.
        return jnp.dot(w_ref[...], s_ref[...],
                       preferred_element_type=jnp.float32,
                       precision=lax.Precision.DEFAULT) + b_ref[...]

    im2col(x)
    h = jnp.maximum(conv(w1_ref, b1_ref), 0.0)
    # TODO(synk): dropout == identity (eval mode).
    im2col(h)
    y = conv(w2_ref, b2_ref) + x
    o_ref[...] = jnp.maximum(y, 0.0).astype(o_ref.dtype)


def resblock_forward(x, w1, w2, bn1, bn2, eps=1e-5,
                     vmem_compute_budget=24 << 20):
    """x: (N, C, H, W) f32; w1/w2: (C, C, K, K); bn*: (gamma, beta, mean, var)."""
    N, C, H, W = x.shape
    HW = H * W
    Cp = max(8, ((C + 7) // 8) * 8)              # pad channels to sublane multiple
    KKC = K * K * Cp

    x = x.astype(jnp.float32)
    g1, beta1, m1, v1 = bn1
    g2, beta2, m2, v2 = bn2
    s1 = (g1 / jnp.sqrt(v1 + eps)).astype(jnp.float32)
    bb1 = (beta1 - m1 * s1).astype(jnp.float32)
    s2 = (g2 / jnp.sqrt(v2 + eps)).astype(jnp.float32)
    bb2 = (beta2 - m2 * s2).astype(jnp.float32)

    def prep_w(w, s):
        # Fold BN scale into Cout, pad channels, and lay out as one lane-dense
        # (Cp, K*K*Cp) operand matching the im2col scratch row order
        # (column index = (dy*K + dx)*Cp + cin).
        w = w.astype(jnp.float32) * s[:, None, None, None]
        w = jnp.pad(w, ((0, Cp - C), (0, Cp - C), (0, 0), (0, 0)))
        return jnp.transpose(w, (0, 2, 3, 1)).reshape(Cp, KKC)

    w1v = prep_w(w1, s1)
    w2v = prep_w(w2, s2)
    b1v = jnp.pad(bb1, (0, Cp - C)).reshape(Cp, 1)
    b2v = jnp.pad(bb2, (0, Cp - C)).reshape(Cp, 1)

    # ---- images per grid step (lane tile L = nb*HW), VMEM-budgeted ---------
    # Per-lane bytes: im2col scratch + double-buffered in/out tiles + mask.
    bytes_per_lane = 4 * (KKC + 4 * Cp + 2 * K * K)
    nb = max(1, vmem_compute_budget // (bytes_per_lane * HW))
    nb = min(nb, N)
    if N >= 2:
        nb = min(nb, (N + 1) // 2)     # keep grid >= 2 so both v7x cores get work
    N_pad = ((N + nb - 1) // nb) * nb  # pad batch: any N works (no nb=1 cliff)
    L = nb * HW
    grid = (N_pad // nb,)

    # ---- per-tap boundary masks (periodic per image), built once on host ---
    rows = jnp.arange(HW, dtype=jnp.int32) // W
    cols = jnp.arange(HW, dtype=jnp.int32) % W
    taps = []
    for dy in range(K):
        oy = dy - PAD
        for dx in range(K):
            ox = dx - PAD
            m = jnp.ones((HW,), jnp.bool_)
            if oy > 0:
                m = m & (rows < H - oy)
            elif oy < 0:
                m = m & (rows >= -oy)
            if ox > 0:
                m = m & (cols < W - ox)
            elif ox < 0:
                m = m & (cols >= -ox)
            taps.append(m)
    mask = jnp.tile(jnp.stack(taps).astype(jnp.float32), (1, nb))   # (K*K, L)

    # (N, C, H, W) -> (Cp, N_pad*HW): channels on sublanes, batch*spatial lanes.
    # TODO(synk): in a residual tower, keep this lane-dense layout across the
    # whole chain and transpose only at tower entry/exit.
    xt = jnp.transpose(x, (1, 0, 2, 3)).reshape(C, N * HW)
    xt = jnp.pad(xt, ((0, Cp - C), (0, (N_pad - N) * HW)))

    kernel = functools.partial(_resblock_kernel, W=W)

    out = pl.pallas_call(
        kernel,
        out_shape=jax.ShapeDtypeStruct((Cp, N_pad * HW), jnp.float32),
        grid_spec=pltpu.PrefetchScalarGridSpec(
            num_scalar_prefetch=0,
            grid=grid,
            in_specs=[
                pl.BlockSpec((Cp, KKC), lambda b: (0, 0)),     # w1 (resident)
                pl.BlockSpec((Cp, 1), lambda b: (0, 0)),       # b1
                pl.BlockSpec((Cp, KKC), lambda b: (0, 0)),     # w2 (resident)
                pl.BlockSpec((Cp, 1), lambda b: (0, 0)),       # b2
                pl.BlockSpec((K * K, L), lambda b: (0, 0)),    # masks (resident)
                pl.BlockSpec((Cp, L), lambda b: (0, b)),       # x
            ],
            out_specs=pl.BlockSpec((Cp, L), lambda b: (0, b)),
            scratch_shapes=[pltpu.VMEM((KKC, L), jnp.float32)],  # im2col scratch
        ),
        compiler_params=pltpu.CompilerParams(
            dimension_semantics=("parallel",),
            vmem_limit_bytes=32 * 1024 * 1024,   # safe on v7x; above v5e default
        ),
    )(w1v, b1v, w2v, b2v, mask, xt)

    # (Cp, N_pad*HW) -> (N, C, H, W)
    return out[:C, :N * HW].reshape(C, N, H, W).transpose(1, 0, 2, 3)


def resblock_reference(x, w1, w2, bn1, bn2, eps=1e-5):
    """Plain-JAX reference matching PyTorch eval-mode forward (full f32)."""
    def conv(inp, w):
        return jax.lax.conv_general_dilated(
            inp, w, window_strides=(1, 1), padding=((PAD, PAD), (PAD, PAD)),
            dimension_numbers=("NCHW", "OIHW", "NCHW"),
            precision=jax.lax.Precision.HIGHEST)

    def bn(inp, p):
        g, b, m, v = p
        inv = g / jnp.sqrt(v + eps)
        return (inp - m[None, :, None, None]) * inv[None, :, None, None] \
            + b[None, :, None, None]

    out = jax.nn.relu(bn(conv(x, w1), bn1))
    out = bn(conv(out, w2), bn2) + x
    return jax.nn.relu(out)


if __name__ == "__main__":
    N, C, H, W = 2, 4, 16, 16

    key = jax.random.PRNGKey(0)
    kx, kw1, kw2, kg1, kb1, km1, kv1, kg2, kb2, km2, kv2 = jax.random.split(key, 11)

    x = jax.random.normal(kx, (N, C, H, W), dtype=jnp.float32)
    w1 = 0.1 * jax.random.normal(kw1, (C, C, K, K), dtype=jnp.float32)
    w2 = 0.1 * jax.random.normal(kw2, (C, C, K, K), dtype=jnp.float32)

    bn1 = (jax.random.uniform(kg1, (C,), minval=0.5, maxval=1.5),
           0.1 * jax.random.normal(kb1, (C,)),
           0.1 * jax.random.normal(km1, (C,)),
           jax.random.uniform(kv1, (C,), minval=0.5, maxval=1.5))
    bn2 = (jax.random.uniform(kg2, (C,), minval=0.5, maxval=1.5),
           0.1 * jax.random.normal(kb2, (C,)),
           0.1 * jax.random.normal(km2, (C,)),
           jax.random.uniform(kv2, (C,), minval=0.5, maxval=1.5))

    out = jax.block_until_ready(resblock_forward(x, w1, w2, bn1, bn2))
    ref = jax.block_until_ready(resblock_reference(x, w1, w2, bn1, bn2))

    assert out.shape == (N, C, H, W)
    # Tolerance widened vs the HIGHEST-precision f32 reference because the
    # kernel's matmuls use DEFAULT precision (single bf16 MXU pass, f32 accum).
    assert jnp.allclose(out, ref, rtol=3e-2, atol=3e-2), \
        f"max abs err {jnp.max(jnp.abs(out - ref))}"

    print("KERNEL_OK")
</pallas_src>

<mosaic_0001>
module attributes {stable_mosaic.version = 11 : i64} {
  func.func @_resblock_kernel(%arg0: i32, %arg1: memref<8x200xf32, #tpu.memory_space<vmem>>, %arg2: memref<8x1xf32, #tpu.memory_space<vmem>>, %arg3: memref<8x200xf32, #tpu.memory_space<vmem>>, %arg4: memref<8x1xf32, #tpu.memory_space<vmem>>, %arg5: memref<25x256xf32, #tpu.memory_space<vmem>>, %arg6: memref<8x256xf32, #tpu.memory_space<vmem>>, %arg7: memref<8x256xf32, #tpu.memory_space<vmem>>, %arg8: memref<200x256xf32, #tpu.memory_space<vmem>>) attributes {dimension_semantics = [#tpu.dimension_semantics<parallel>], iteration_bounds = array<i64: 2>, scalar_prefetch = 0 : i64, scratch_operands = 1 : i64, tpu.core_type = #tpu.core_type<tc>, window_params = [{pipeline_mode = #tpu.pipeline_mode<synchronous>, transform_indices = @transform_0, window_bounds = array<i64: 8, 200>}, {pipeline_mode = #tpu.pipeline_mode<synchronous>, transform_indices = @transform_1, window_bounds = array<i64: 8, 1>}, {pipeline_mode = #tpu.pipeline_mode<synchronous>, transform_indices = @transform_2, window_bounds = array<i64: 8, 200>}, {pipeline_mode = #tpu.pipeline_mode<synchronous>, transform_indices = @transform_3, window_bounds = array<i64: 8, 1>}, {pipeline_mode = #tpu.pipeline_mode<synchronous>, transform_indices = @transform_4, window_bounds = array<i64: 25, 256>}, {transform_indices = @transform_5, window_bounds = array<i64: 8, 256>}, {transform_indices = @transform_6, window_bounds = array<i64: 8, 256>}]} {
    %c0 = arith.constant 0 : index
    %c0_0 = arith.constant 0 : index
    %0 = vector.load %arg6[%c0, %c0_0] : memref<8x256xf32, #tpu.memory_space<vmem>>, vector<8x256xf32>
    %c34_i32 = arith.constant 34 : i32
    %1 = tpu.dynamic_rotate %0 by %c34_i32 dim 1 : vector<8x256xf32>, i32 -> vector<8x256xf32>
    %c0_1 = arith.constant 0 : index
    %c0_2 = arith.constant 0 : index
    %2 = vector.load %arg5[%c0_1, %c0_2] : memref<25x256xf32, #tpu.memory_space<vmem>>, vector<1x256xf32>
    %3 = vector.broadcast %2 : vector<1x256xf32> to vector<8x256xf32>
    %4 = arith.mulf %1, %3 : vector<8x256xf32>
    %c0_3 = arith.constant 0 : index
    %c0_4 = arith.constant 0 : index
    %5 = vector.load %arg8[%c0_3, %c0_4] : memref<200x256xf32, #tpu.memory_space<vmem>>, vector<8x256xf32>
    tpu.vector_store %arg8[%c0_3, %c0_4], %4 {strides = array<i32>} : memref<200x256xf32, #tpu.memory_space<vmem>>, vector<8x256xf32>,
    %c33_i32 = arith.constant 33 : i32
    %6 = tpu.dynamic_rotate %0 by %c33_i32 dim 1 : vector<8x256xf32>, i32 -> vector<8x256xf32>
    %c1 = arith.constant 1 : index
    %c0_5 = arith.constant 0 : index
    %7 = vector.load %arg5[%c1, %c0_5] : memref<25x256xf32, #tpu.memory_space<vmem>>, vector<1x256xf32>
    %8 = vector.broadcast %7 : vector<1x256xf32> to vector<8x256xf32>
    %9 = arith.mulf %6, %8 : vector<8x256xf32>
    %c8 = arith.constant 8 : index
    %c0_6 = arith.constant 0 : index
    %10 = vector.load %arg8[%c8, %c0_6] : memref<200x256xf32, #tpu.memory_space<vmem>>, vector<8x256xf32>
    tpu.vector_store %arg8[%c8, %c0_6], %9 {strides = array<i32>} : memref<200x256xf32, #tpu.memory_space<vmem>>, vector<8x256xf32>,
    %c32_i32 = arith.constant 32 : i32
    %11 = tpu.dynamic_rotate %0 by %c32_i32 dim 1 : vector<8x256xf32>, i32 -> vector<8x256xf32>
    %c2 = arith.constant 2 : index
    %c0_7 = arith.constant 0 : index
    %12 = vector.load %arg5[%c2, %c0_7] : memref<25x256xf32, #tpu.memory_space<vmem>>, vector<1x256xf32>
    %13 = vector.broadcast %12 : vector<1x256xf32> to vector<8x256xf32>
    %14 = arith.mulf %11, %13 : vector<8x256xf32>
    %c16 = arith.constant 16 : index
    %c0_8 = arith.constant 0 : index
    %15 = vector.load %arg8[%c16, %c0_8] : memref<200x256xf32, #tpu.memory_space<vmem>>, vector<8x256xf32>
    tpu.vector_store %arg8[%c16, %c0_8], %14 {strides = array<i32>} : memref<200x256xf32, #tpu.memory_space<vmem>>, vector<8x256xf32>,
    %c31_i32 = arith.constant 31 : i32
    %16 = tpu.dynamic_rotate %0 by %c31_i32 dim 1 : vector<8x256xf32>, i32 -> vector<8x256xf32>
    %c3 = arith.constant 3 : index
    %c0_9 = arith.constant 0 : index
    %17 = vector.load %arg5[%c3, %c0_9] : memref<25x256xf32, #tpu.memory_space<vmem>>, vector<1x256xf32>
    %18 = vector.broadcast %17 : vector<1x256xf32> to vector<8x256xf32>
    %19 = arith.mulf %16, %18 : vector<8x256xf32>
    %c24 = arith.constant 24 : index
    %c0_10 = arith.constant 0 : index
    %20 = vector.load %arg8[%c24, %c0_10] : memref<200x256xf32, #tpu.memory_space<vmem>>, vector<8x256xf32>
    tpu.vector_store %arg8[%c24, %c0_10], %19 {strides = array<i32>} : memref<200x256xf32, #tpu.memory_space<vmem>>, vector<8x256xf32>,
    %c30_i32 = arith.constant 30 : i32
    %21 = tpu.dynamic_rotate %0 by %c30_i32 dim 1 : vector<8x256xf32>, i32 -> vector<8x256xf32>
    %c4 = arith.constant 4 : index
    %c0_11 = arith.constant 0 : index
    %22 = vector.load %arg5[%c4, %c0_11] : memref<25x256xf32, #tpu.memory_space<vmem>>, vector<1x256xf32>
    %23 = vector.broadcast %22 : vector<1x256xf32> to vector<8x256xf32>
    %24 = arith.mulf %21, %23 : vector<8x256xf32>
    %c32 = arith.constant 32 : index
    %c0_12 = arith.constant 0 : index
    %25 = vector.load %arg8[%c32, %c0_12] : memref<200x256xf32, #tpu.memory_space<vmem>>, vector<8x256xf32>
    tpu.vector_store %arg8[%c32, %c0_12], %24 {strides = array<i32>} : memref<200x256xf32, #tpu.memory_space<vmem>>, vector<8x256xf32>,
    %c18_i32 = arith.constant 18 : i32
    %26 = tpu.dynamic_rotate %0 by %c18_i32 dim 1 : vector<8x256xf32>, i32 -> vector<8x256xf32>
    %c5 = arith.constant 5 : index
    %c0_13 = arith.constant 0 : index
    %27 = vector.load %arg5[%c5, %c0_13] : memref<25x256xf32, #tpu.memory_space<vmem>>, vector<1x256xf32>
    %28 = vector.broadcast %27 : vector<1x256xf32> to vector<8x256xf32>
    %29 = arith.mulf %26, %28 : vector<8x256xf32>
    %c40 = arith.constant 40 : index
    %c0_14 = arith.constant 0 : index
    %30 = vector.load %arg8[%c40, %c0_14] : memref<200x256xf32, #tpu.memory_space<vmem>>, vector<8x256xf32>
    tpu.vector_store %arg8[%c40, %c0_14], %29 {strides = array<i32>} : memref<200x256xf32, #tpu.memory_space<vmem>>, vector<8x256xf32>,
    %c17_i32 = arith.constant 17 : i32
    %31 = tpu.dynamic_rotate %0 by %c17_i32 dim 1 : vector<8x256xf32>, i32 -> vector<8x256xf32>
    %c6 = arith.constant 6 : index
    %c0_15 = arith.constant 0 : index
    %32 = vector.load %arg5[%c6, %c0_15] : memref<25x256xf32, #tpu.memory_space<vmem>>, vector<1x256xf32>
    %33 = vector.broadcast %32 : vector<1x256xf32> to vector<8x256xf32>
    %34 = arith.mulf %31, %33 : vector<8x256xf32>
    %c48 = arith.constant 48 : index
    %c0_16 = arith.constant 0 : index
    %35 = vector.load %arg8[%c48, %c0_16] : memref<200x256xf32, #tpu.memory_space<vmem>>, vector<8x256xf32>
    tpu.vector_store %arg8[%c48, %c0_16], %34 {strides = array<i32>} : memref<200x256xf32, #tpu.memory_space<vmem>>, vector<8x256xf32>,
    %c16_i32 = arith.constant 16 : i32
    %36 = tpu.dynamic_rotate %0 by %c16_i32 dim 1 : vector<8x256xf32>, i32 -> vector<8x256xf32>
    %c7 = arith.constant 7 : index
    %c0_17 = arith.constant 0 : index
    %37 = vector.load %arg5[%c7, %c0_17] : memref<25x256xf32, #tpu.memory_space<vmem>>, vector<1x256xf32>
    %38 = vector.broadcast %37 : vector<1x256xf32> to vector<8x256xf32>
    %39 = arith.mulf %36, %38 : vector<8x256xf32>
    %c56 = arith.constant 56 : index
    %c0_18 = arith.constant 0 : index
    %40 = vector.load %arg8[%c56, %c0_18] : memref<200x256xf32, #tpu.memory_space<vmem>>, vector<8x256xf32>
    tpu.vector_store %arg8[%c56, %c0_18], %39 {strides = array<i32>} : memref<200x256xf32, #tpu.memory_space<vmem>>, vector<8x256xf32>,
    %c15_i32 = arith.constant 15 : i32
    %41 = tpu.dynamic_rotate %0 by %c15_i32 dim 1 : vector<8x256xf32>, i32 -> vector<8x256xf32>
    %c8_19 = arith.constant 8 : index
    %c0_20 = arith.constant 0 : index
    %42 = vector.load %arg5[%c8_19, %c0_20] : memref<25x256xf32, #tpu.memory_space<vmem>>, vector<1x256xf32>
    %43 = vector.broadcast %42 : vector<1x256xf32> to vector<8x256xf32>
    %44 = arith.mulf %41, %43 : vector<8x256xf32>
    %c64 = arith.constant 64 : index
    %c0_21 = arith.constant 0 : index
    %45 = vector.load %arg8[%c64, %c0_21] : memref<200x256xf32, #tpu.memory_space<vmem>>, vector<8x256xf32>
    tpu.vector_store %arg8[%c64, %c0_21], %44 {strides = array<i32>} : memref<200x256xf32, #tpu.memory_space<vmem>>, vector<8x256xf32>,
    %c14_i32 = arith.constant 14 : i32
    %46 = tpu.dynamic_rotate %0 by %c14_i32 dim 1 : vector<8x256xf32>, i32 -> vector<8x256xf32>
    %c9 = arith.constant 9 : index
    %c0_22 = arith.constant 0 : index
    %47 = vector.load %arg5[%c9, %c0_22] : memref<25x256xf32, #tpu.memory_space<vmem>>, vector<1x256xf32>
    %48 = vector.broadcast %47 : vector<1x256xf32> to vector<8x256xf32>
    %49 = arith.mulf %46, %48 : vector<8x256xf32>
    %c72 = arith.constant 72 : index
    %c0_23 = arith.constant 0 : index
    %50 = vector.load %arg8[%c72, %c0_23] : memref<200x256xf32, #tpu.memory_space<vmem>>, vector<8x256xf32>
    tpu.vector_store %arg8[%c72, %c0_23], %49 {strides = array<i32>} : memref<200x256xf32, #tpu.memory_space<vmem>>, vector<8x256xf32>,
    %c2_i32 = arith.constant 2 : i32
    %51 = tpu.dynamic_rotate %0 by %c2_i32 dim 1 : vector<8x256xf32>, i32 -> vector<8x256xf32>
    %c10 = arith.constant 10 : index
    %c0_24 = arith.constant 0 : index
    %52 = vector.load %arg5[%c10, %c0_24] : memref<25x256xf32, #tpu.memory_space<vmem>>, vector<1x256xf32>
    %53 = vector.broadcast %52 : vector<1x256xf32> to vector<8x256xf32>
    %54 = arith.mulf %51, %53 : vector<8x256xf32>
    %c80 = arith.constant 80 : index
    %c0_25 = arith.constant 0 : index
    %55 = vector.load %arg8[%c80, %c0_25] : memref<200x256xf32, #tpu.memory_space<vmem>>, vector<8x256xf32>
    tpu.vector_store %arg8[%c80, %c0_25], %54 {strides = array<i32>} : memref<200x256xf32, #tpu.memory_space<vmem>>, vector<8x256xf32>,
    %c1_i32 = arith.constant 1 : i32
    %56 = tpu.dynamic_rotate %0 by %c1_i32 dim 1 : vector<8x256xf32>, i32 -> vector<8x256xf32>
    %c11 = arith.constant 11 : index
    %c0_26 = arith.constant 0 : index
    %57 = vector.load %arg5[%c11, %c0_26] : memref<25x256xf32, #tpu.memory_space<vmem>>, vector<1x256xf32>
    %58 = vector.broadcast %57 : vector<1x256xf32> to vector<8x256xf32>
    %59 = arith.mulf %56, %58 : vector<8x256xf32>
    %c88 = arith.constant 88 : index
    %c0_27 = arith.constant 0 : index
    %60 = vector.load %arg8[%c88, %c0_27] : memref<200x256xf32, #tpu.memory_space<vmem>>, vector<8x256xf32>
    tpu.vector_store %arg8[%c88, %c0_27], %59 {strides = array<i32>} : memref<200x256xf32, #tpu.memory_space<vmem>>, vector<8x256xf32>,
    %c12 = arith.constant 12 : index
    %c0_28 = arith.constant 0 : index
    %61 = vector.load %arg5[%c12, %c0_28] : memref<25x256xf32, #tpu.memory_space<vmem>>, vector<1x256xf32>
    %62 = vector.broadcast %61 : vector<1x256xf32> to vector<8x256xf32>
    %63 = arith.mulf %0, %62 : vector<8x256xf32>
    %c96 = arith.constant 96 : index
    %c0_29 = arith.constant 0 : index
    %64 = vector.load %arg8[%c96, %c0_29] : memref<200x256xf32, #tpu.memory_space<vmem>>, vector<8x256xf32>
    tpu.vector_store %arg8[%c96, %c0_29], %63 {strides = array<i32>} : memref<200x256xf32, #tpu.memory_space<vmem>>, vector<8x256xf32>,
    %c255_i32 = arith.constant 255 : i32
    %65 = tpu.dynamic_rotate %0 by %c255_i32 dim 1 : vector<8x256xf32>, i32 -> vector<8x256xf32>
    %c13 = arith.constant 13 : index
    %c0_30 = arith.constant 0 : index
    %66 = vector.load %arg5[%c13, %c0_30] : memref<25x256xf32, #tpu.memory_space<vmem>>, vector<1x256xf32>
    %67 = vector.broadcast %66 : vector<1x256xf32> to vector<8x256xf32>
    %68 = arith.mulf %65, %67 : vector<8x256xf32>
    %c104 = arith.constant 104 : index
    %c0_31 = arith.constant 0 : index
    %69 = vector.load %arg8[%c104, %c0_31] : memref<200x256xf32, #tpu.memory_space<vmem>>, vector<8x256xf32>
    tpu.vector_store %arg8[%c104, %c0_31], %68 {strides = array<i32>} : memref<200x256xf32, #tpu.memory_space<vmem>>, vector<8x256xf32>,
    %c254_i32 = arith.constant 254 : i32
    %70 = tpu.dynamic_rotate %0 by %c254_i32 dim 1 : vector<8x256xf32>, i32 -> vector<8x256xf32>
    %c14 = arith.constant 14 : index
    %c0_32 = arith.constant 0 : index
    %71 = vector.load %arg5[%c14, %c0_32] : memref<25x256xf32, #tpu.memory_space<vmem>>, vector<1x256xf32>
    %72 = vector.broadcast %71 : vector<1x256xf32> to vector<8x256xf32>
    %73 = arith.mulf %70, %72 : vector<8x256xf32>
    %c112 = arith.constant 112 : index
    %c0_33 = arith.constant 0 : index
    %74 = vector.load %arg8[%c112, %c0_33] : memref<200x256xf32, #tpu.memory_space<vmem>>, vector<8x256xf32>
    tpu.vector_store %arg8[%c112, %c0_33], %73 {strides = array<i32>} : memref<200x256xf32, #tpu.memory_space<vmem>>, vector<8x256xf32>,
    %c242_i32 = arith.constant 242 : i32
    %75 = tpu.dynamic_rotate %0 by %c242_i32 dim 1 : vector<8x256xf32>, i32 -> vector<8x256xf32>
    %c15 = arith.constant 15 : index
    %c0_34 = arith.constant 0 : index
    %76 = vector.load %arg5[%c15, %c0_34] : memref<25x256xf32, #tpu.memory_space<vmem>>, vector<1x256xf32>
    %77 = vector.broadcast %76 : vector<1x256xf32> to vector<8x256xf32>
    %78 = arith.mulf %75, %77 : vector<8x256xf32>
    %c120 = arith.constant 120 : index
    %c0_35 = arith.constant 0 : index
    %79 = vector.load %arg8[%c120, %c0_35] : memref<200x256xf32, #tpu.memory_space<vmem>>, vector<8x256xf32>
    tpu.vector_store %arg8[%c120, %c0_35], %78 {strides = array<i32>} : memref<200x256xf32, #tpu.memory_space<vmem>>, vector<8x256xf32>,
    %c241_i32 = arith.constant 241 : i32
    %80 = tpu.dynamic_rotate %0 by %c241_i32 dim 1 : vector<8x256xf32>, i32 -> vector<8x256xf32>
    %c16_36 = arith.constant 16 : index
    %c0_37 = arith.constant 0 : index
    %81 = vector.load %arg5[%c16_36, %c0_37] : memref<25x256xf32, #tpu.memory_space<vmem>>, vector<1x256xf32>
    %82 = vector.broadcast %81 : vector<1x256xf32> to vector<8x256xf32>
    %83 = arith.mulf %80, %82 : vector<8x256xf32>
    %c128 = arith.constant 128 : index
    %c0_38 = arith.constant 0 : index
    %84 = vector.load %arg8[%c128, %c0_38] : memref<200x256xf32, #tpu.memory_space<vmem>>, vector<8x256xf32>
    tpu.vector_store %arg8[%c128, %c0_38], %83 {strides = array<i32>} : memref<200x256xf32, #tpu.memory_space<vmem>>, vector<8x256xf32>,
    %c240_i32 = arith.constant 240 : i32
    %85 = tpu.dynamic_rotate %0 by %c240_i32 dim 1 : vector<8x256xf32>, i32 -> vector<8x256xf32>
    %c17 = arith.constant 17 : index
    %c0_39 = arith.constant 0 : index
    %86 = vector.load %arg5[%c17, %c0_39] : memref<25x256xf32, #tpu.memory_space<vmem>>, vector<1x256xf32>
    %87 = vector.broadcast %86 : vector<1x256xf32> to vector<8x256xf32>
    %88 = arith.mulf %85, %87 : vector<8x256xf32>
    %c136 = arith.constant 136 : index
    %c0_40 = arith.constant 0 : index
    %89 = vector.load %arg8[%c136, %c0_40] : memref<200x256xf32, #tpu.memory_space<vmem>>, vector<8x256xf32>
    tpu.vector_store %arg8[%c136, %c0_40], %88 {strides = array<i32>} : memref<200x256xf32, #tpu.memory_space<vmem>>, vector<8x256xf32>,
    %c239_i32 = arith.constant 239 : i32
    %90 = tpu.dynamic_rotate %0 by %c239_i32 dim 1 : vector<8x256xf32>, i32 -> vector<8x256xf32>
    %c18 = arith.constant 18 : index
    %c0_41 = arith.constant 0 : index
    %91 = vector.load %arg5[%c18, %c0_41] : memref<25x256xf32, #tpu.memory_space<vmem>>, vector<1x256xf32>
    %92 = vector.broadcast %91 : vector<1x256xf32> to vector<8x256xf32>
    %93 = arith.mulf %90, %92 : vector<8x256xf32>
    %c144 = arith.constant 144 : index
    %c0_42 = arith.constant 0 : index
    %94 = vector.load %arg8[%c144, %c0_42] : memref<200x256xf32, #tpu.memory_space<vmem>>, vector<8x256xf32>
    tpu.vector_store %arg8[%c144, %c0_42], %93 {strides = array<i32>} : memref<200x256xf32, #tpu.memory_space<vmem>>, vector<8x256xf32>,
    %c238_i32 = arith.constant 238 : i32
    %95 = tpu.dynamic_rotate %0 by %c238_i32 dim 1 : vector<8x256xf32>, i32 -> vector<8x256xf32>
    %c19 = arith.constant 19 : index
    %c0_43 = arith.constant 0 : index
    %96 = vector.load %arg5[%c19, %c0_43] : memref<25x256xf32, #tpu.memory_space<vmem>>, vector<1x256xf32>
    %97 = vector.broadcast %96 : vector<1x256xf32> to vector<8x256xf32>
    %98 = arith.mulf %95, %97 : vector<8x256xf32>
    %c152 = arith.constant 152 : index
    %c0_44 = arith.constant 0 : index
    %99 = vector.load %arg8[%c152, %c0_44] : memref<200x256xf32, #tpu.memory_space<vmem>>, vector<8x256xf32>
    tpu.vector_store %arg8[%c152, %c0_44], %98 {strides = array<i32>} : memref<200x256xf32, #tpu.memory_space<vmem>>, vector<8x256xf32>,
    %c226_i32 = arith.constant 226 : i32
    %100 = tpu.dynamic_rotate %0 by %c226_i32 dim 1 : vector<8x256xf32>, i32 -> vector<8x256xf32>
    %c20 = arith.constant 20 : index
    %c0_45 = arith.constant 0 : index
    %101 = vector.load %arg5[%c20, %c0_45] : memref<25x256xf32, #tpu.memory_space<vmem>>, vector<1x256xf32>
    %102 = vector.broadcast %101 : vector<1x256xf32> to vector<8x256xf32>
    %103 = arith.mulf %100, %102 : vector<8x256xf32>
    %c160 = arith.constant 160 : index
    %c0_46 = arith.constant 0 : index
    %104 = vector.load %arg8[%c160, %c0_46] : memref<200x256xf32, #tpu.memory_space<vmem>>, vector<8x256xf32>
    tpu.vector_store %arg8[%c160, %c0_46], %103 {strides = array<i32>} : memref<200x256xf32, #tpu.memory_space<vmem>>, vector<8x256xf32>,
    %c225_i32 = arith.constant 225 : i32
    %105 = tpu.dynamic_rotate %0 by %c225_i32 dim 1 : vector<8x256xf32>, i32 -> vector<8x256xf32>
    %c21 = arith.constant 21 : index
    %c0_47 = arith.constant 0 : index
    %106 = vector.load %arg5[%c21, %c0_47] : memref<25x256xf32, #tpu.memory_space<vmem>>, vector<1x256xf32>
    %107 = vector.broadcast %106 : vector<1x256xf32> to vector<8x256xf32>
    %108 = arith.mulf %105, %107 : vector<8x256xf32>
    %c168 = arith.constant 168 : index
    %c0_48 = arith.constant 0 : index
    %109 = vector.load %arg8[%c168, %c0_48] : memref<200x256xf32, #tpu.memory_space<vmem>>, vector<8x256xf32>
    tpu.vector_store %arg8[%c168, %c0_48], %108 {strides = array<i32>} : memref<200x256xf32, #tpu.memory_space<vmem>>, vector<8x256xf32>,
    %c224_i32 = arith.constant 224 : i32
    %110 = tpu.dynamic_rotate %0 by %c224_i32 dim 1 : vector<8x256xf32>, i32 -> vector<8x256xf32>
    %c22 = arith.constant 22 : index
    %c0_49 = arith.constant 0 : index
    %111 = vector.load %arg5[%c22, %c0_49] : memref<25x256xf32, #tpu.memory_space<vmem>>, vector<1x256xf32>
    %112 = vector.broadcast %111 : vector<1x256xf32> to vector<8x256xf32>
    %113 = arith.mulf %110, %112 : vector<8x256xf32>
    %c176 = arith.constant 176 : index
    %c0_50 = arith.constant 0 : index
    %114 = vector.load %arg8[%c176, %c0_50] : memref<200x256xf32, #tpu.memory_space<vmem>>, vector<8x256xf32>
    tpu.vector_store %arg8[%c176, %c0_50], %113 {strides = array<i32>} : memref<200x256xf32, #tpu.memory_space<vmem>>, vector<8x256xf32>,
    %c223_i32 = arith.constant 223 : i32
    %115 = tpu.dynamic_rotate %0 by %c223_i32 dim 1 : vector<8x256xf32>, i32 -> vector<8x256xf32>
    %c23 = arith.constant 23 : index
    %c0_51 = arith.constant 0 : index
    %116 = vector.load %arg5[%c23, %c0_51] : memref<25x256xf32, #tpu.memory_space<vmem>>, vector<1x256xf32>
    %117 = vector.broadcast %116 : vector<1x256xf32> to vector<8x256xf32>
    %118 = arith.mulf %115, %117 : vector<8x256xf32>
    %c184 = arith.constant 184 : index
    %c0_52 = arith.constant 0 : index
    %119 = vector.load %arg8[%c184, %c0_52] : memref<200x256xf32, #tpu.memory_space<vmem>>, vector<8x256xf32>
    tpu.vector_store %arg8[%c184, %c0_52], %118 {strides = array<i32>} : memref<200x256xf32, #tpu.memory_space<vmem>>, vector<8x256xf32>,
    %c222_i32 = arith.constant 222 : i32
    %120 = tpu.dynamic_rotate %0 by %c222_i32 dim 1 : vector<8x256xf32>, i32 -> vector<8x256xf32>
    %c24_53 = arith.constant 24 : index
    %c0_54 = arith.constant 0 : index
    %121 = vector.load %arg5[%c24_53, %c0_54] : memref<25x256xf32, #tpu.memory_space<vmem>>, vector<1x256xf32>
    %122 = vector.broadcast %121 : vector<1x256xf32> to vector<8x256xf32>
    %123 = arith.mulf %120, %122 : vector<8x256xf32>
    %c192 = arith.constant 192 : index
    %c0_55 = arith.constant 0 : index
    %124 = vector.load %arg8[%c192, %c0_55] : memref<200x256xf32, #tpu.memory_space<vmem>>, vector<8x256xf32>
    tpu.vector_store %arg8[%c192, %c0_55], %123 {strides = array<i32>} : memref<200x256xf32, #tpu.memory_space<vmem>>, vector<8x256xf32>,
    %c0_56 = arith.constant 0 : index
    %c0_57 = arith.constant 0 : index
    %125 = vector.load %arg1[%c0_56, %c0_57] : memref<8x200xf32, #tpu.memory_space<vmem>>, vector<8x200xf32>
    %c0_58 = arith.constant 0 : index
    %c0_59 = arith.constant 0 : index
    %126 = vector.load %arg8[%c0_58, %c0_59] : memref<200x256xf32, #tpu.memory_space<vmem>>, vector<200x256xf32>
    %cst = arith.constant dense<0.000000e+00> : vector<8x256xf32>
    %127 = tpu.matmul %125, %126, %cst {dimension_numbers = #tpu.dot_dimension_numbers<[1], [0], [0], [1], [0, 0, 1, 1], [], []>} : vector<8x200xf32>, vector<200x256xf32>, vector<8x256xf32> -> vector<8x256xf32>
    %c0_60 = arith.constant 0 : index
    %c0_61 = arith.constant 0 : index
    %128 = vector.load %arg2[%c0_60, %c0_61] : memref<8x1xf32, #tpu.memory_space<vmem>>, vector<8x1xf32>
    %129 = vector.broadcast %128 : vector<8x1xf32> to vector<8x256xf32>
    %130 = arith.addf %127, %129 : vector<8x256xf32>
    %cst_62 = arith.constant 0.000000e+00 : f32
    %131 = vector.broadcast %cst_62 : f32 to vector<8x256xf32>
    %132 = arith.maximumf %130, %131 : vector<8x256xf32>
    %c34_i32_63 = arith.constant 34 : i32
    %133 = tpu.dynamic_rotate %132 by %c34_i32_63 dim 1 : vector<8x256xf32>, i32 -> vector<8x256xf32>
    %c0_64 = arith.constant 0 : index
    %c0_65 = arith.constant 0 : index
    %134 = vector.load %arg5[%c0_64, %c0_65] : memref<25x256xf32, #tpu.memory_space<vmem>>, vector<1x256xf32>
    %135 = vector.broadcast %134 : vector<1x256xf32> to vector<8x256xf32>
    %136 = arith.mulf %133, %135 : vector<8x256xf32>
    %c0_66 = arith.constant 0 : index
    %c0_67 = arith.constant 0 : index
    %137 = vector.load %arg8[%c0_66, %c0_67] : memref<200x256xf32, #tpu.memory_space<vmem>>, vector<8x256xf32>
    tpu.vector_store %arg8[%c0_66, %c0_67], %136 {strides = array<i32>} : memref<200x256xf32, #tpu.memory_space<vmem>>, vector<8x256xf32>,
    %c33_i32_68 = arith.constant 33 : i32
    %138 = tpu.dynamic_rotate %132 by %c33_i32_68 dim 1 : vector<8x256xf32>, i32 -> vector<8x256xf32>
    %c1_69 = arith.constant 1 : index
    %c0_70 = arith.constant 0 : index
    %139 = vector.load %arg5[%c1_69, %c0_70] : memref<25x256xf32, #tpu.memory_space<vmem>>, vector<1x256xf32>
    %140 = vector.broadcast %139 : vector<1x256xf32> to vector<8x256xf32>
    %141 = arith.mulf %138, %140 : vector<8x256xf32>
    %c8_71 = arith.constant 8 : index
    %c0_72 = arith.constant 0 : index
    %142 = vector.load %arg8[%c8_71, %c0_72] : memref<200x256xf32, #tpu.memory_space<vmem>>, vector<8x256xf32>
    tpu.vector_store %arg8[%c8_71, %c0_72], %141 {strides = array<i32>} : memref<200x256xf32, #tpu.memory_space<vmem>>, vector<8x256xf32>,
    %c32_i32_73 = arith.constant 32 : i32
    %143 = tpu.dynamic_rotate %132 by %c32_i32_73 dim 1 : vector<8x256xf32>, i32 -> vector<8x256xf32>
    %c2_74 = arith.constant 2 : index
    %c0_75 = arith.constant 0 : index
    %144 = vector.load %arg5[%c2_74, %c0_75] : memref<25x256xf32, #tpu.memory_space<vmem>>, vector<1x256xf32>
    %145 = vector.broadcast %144 : vector<1x256xf32> to vector<8x256xf32>
    %146 = arith.mulf %143, %145 : vector<8x256xf32>
    %c16_76 = arith.constant 16 : index
    %c0_77 = arith.constant 0 : index
    %147 = vector.load %arg8[%c16_76, %c0_77] : memref<200x256xf32, #tpu.memory_space<vmem>>, vector<8x256xf32>
    tpu.vector_store %arg8[%c16_76, %c0_77], %146 {strides = array<i32>} : memref<200x256xf32, #tpu.memory_space<vmem>>, vector<8x256xf32>,
    %c31_i32_78 = arith.constant 31 : i32
    %148 = tpu.dynamic_rotate %132 by %c31_i32_78 dim 1 : vector<8x256xf32>, i32 -> vector<8x256xf32>
    %c3_79 = arith.constant 3 : index
    %c0_80 = arith.constant 0 : index
    %149 = vector.load %arg5[%c3_79, %c0_80] : memref<25x256xf32, #tpu.memory_space<vmem>>, vector<1x256xf32>
    %150 = vector.broadcast %149 : vector<1x256xf32> to vector<8x256xf32>
    %151 = arith.mulf %148, %150 : vector<8x256xf32>
    %c24_81 = arith.constant 24 : index
    %c0_82 = arith.constant 0 : index
    %152 = vector.load %arg8[%c24_81, %c0_82] : memref<200x256xf32, #tpu.memory_space<vmem>>, vector<8x256xf32>
    tpu.vector_store %arg8[%c24_81, %c0_82], %151 {strides = array<i32>} : memref<200x256xf32, #tpu.memory_space<vmem>>, vector<8x256xf32>,
    %c30_i32_83 = arith.constant 30 : i32
    %153 = tpu.dynamic_rotate %132 by %c30_i32_83 dim 1 : vector<8x256xf32>, i32 -> vector<8x256xf32>
    %c4_84 = arith.constant 4 : index
    %c0_85 = arith.constant 0 : index
    %154 = vector.load %arg5[%c4_84, %c0_85] : memref<25x256xf32, #tpu.memory_space<vmem>>, vector<1x256xf32>
    %155 = vector.broadcast %154 : vector<1x256xf32> to vector<8x256xf32>
    %156 = arith.mulf %153, %155 : vector<8x256xf32>
    %c32_86 = arith.constant 32 : index
    %c0_87 = arith.constant 0 : index
    %157 = vector.load %arg8[%c32_86, %c0_87] : memref<200x256xf32, #tpu.memory_space<vmem>>, vector<8x256xf32>
    tpu.vector_store %arg8[%c32_86, %c0_87], %156 {strides = array<i32>} : memref<200x256xf32, #tpu.memory_space<vmem>>, vector<8x256xf32>,
    %c18_i32_88 = arith.constant 18 : i32
    %158 = tpu.dynamic_rotate %132 by %c18_i32_88 dim 1 : vector<8x256xf32>, i32 -> vector<8x256xf32>
    %c5_89 = arith.constant 5 : index
    %c0_90 = arith.constant 0 : index
    %159 = vector.load %arg5[%c5_89, %c0_90] : memref<25x256xf32, #tpu.memory_space<vmem>>, vector<1x256xf32>
    %160 = vector.broadcast %159 : vector<1x256xf32> to vector<8x256xf32>
    %161 = arith.mulf %158, %160 : vector<8x256xf32>
    %c40_91 = arith.constant 40 : index
    %c0_92 = arith.constant 0 : index
    %162 = vector.load %arg8[%c40_91, %c0_92] : memref<200x256xf32, #tpu.memory_space<vmem>>, vector<8x256xf32>
    tpu.vector_store %arg8[%c40_91, %c0_92], %161 {strides = array<i32>} : memref<200x256xf32, #tpu.memory_space<vmem>>, vector<8x256xf32>,
    %c17_i32_93 = arith.constant 17 : i32
    %163 = tpu.dynamic_rotate %132 by %c17_i32_93 dim 1 : vector<8x256xf32>, i32 -> vector<8x256xf32>
    %c6_94 = arith.constant 6 : index
    %c0_95 = arith.constant 0 : index
    %164 = vector.load %arg5[%c6_94, %c0_95] : memref<25x256xf32, #tpu.memory_space<vmem>>, vector<1x256xf32>
    %165 = vector.broadcast %164 : vector<1x256xf32> to vector<8x256xf32>
    %166 = arith.mulf %163, %165 : vector<8x256xf32>
    %c48_96 = arith.constant 48 : index
    %c0_97 = arith.constant 0 : index
    %167 = vector.load %arg8[%c48_96, %c0_97] : memref<200x256xf32, #tpu.memory_space<vmem>>, vector<8x256xf32>
    tpu.vector_store %arg8[%c48_96, %c0_97], %166 {strides = array<i32>} : memref<200x256xf32, #tpu.memory_space<vmem>>, vector<8x256xf32>,
    %c16_i32_98 = arith.constant 16 : i32
    %168 = tpu.dynamic_rotate %132 by %c16_i32_98 dim 1 : vector<8x256xf32>, i32 -> vector<8x256xf32>
    %c7_99 = arith.constant 7 : index
    %c0_100 = arith.constant 0 : index
    %169 = vector.load %arg5[%c7_99, %c0_100] : memref<25x256xf32, #tpu.memory_space<vmem>>, vector<1x256xf32>
    %170 = vector.broadcast %169 : vector<1x256xf32> to vector<8x256xf32>
    %171 = arith.mulf %168, %170 : vector<8x256xf32>
    %c56_101 = arith.constant 56 : index
    %c0_102 = arith.constant 0 : index
    %172 = vector.load %arg8[%c56_101, %c0_102] : memref<200x256xf32, #tpu.memory_space<vmem>>, vector<8x256xf32>
    tpu.vector_store %arg8[%c56_101, %c0_102], %171 {strides = array<i32>} : memref<200x256xf32, #tpu.memory_space<vmem>>, vector<8x256xf32>,
    %c15_i32_103 = arith.constant 15 : i32
    %173 = tpu.dynamic_rotate %132 by %c15_i32_103 dim 1 : vector<8x256xf32>, i32 -> vector<8x256xf32>
    %c8_104 = arith.constant 8 : index
    %c0_105 = arith.constant 0 : index
    %174 = vector.load %arg5[%c8_104, %c0_105] : memref<25x256xf32, #tpu.memory_space<vmem>>, vector<1x256xf32>
    %175 = vector.broadcast %174 : vector<1x256xf32> to vector<8x256xf32>
    %176 = arith.mulf %173, %175 : vector<8x256xf32>
    %c64_106 = arith.constant 64 : index
    %c0_107 = arith.constant 0 : index
    %177 = vector.load %arg8[%c64_106, %c0_107] : memref<200x256xf32, #tpu.memory_space<vmem>>, vector<8x256xf32>
    tpu.vector_store %arg8[%c64_106, %c0_107], %176 {strides = array<i32>} : memref<200x256xf32, #tpu.memory_space<vmem>>, vector<8x256xf32>,
    %c14_i32_108 = arith.constant 14 : i32
    %178 = tpu.dynamic_rotate %132 by %c14_i32_108 dim 1 : vector<8x256xf32>, i32 -> vector<8x256xf32>
    %c9_109 = arith.constant 9 : index
    %c0_110 = arith.constant 0 : index
    %179 = vector.load %arg5[%c9_109, %c0_110] : memref<25x256xf32, #tpu.memory_space<vmem>>, vector<1x256xf32>
    %180 = vector.broadcast %179 : vector<1x256xf32> to vector<8x256xf32>
    %181 = arith.mulf %178, %180 : vector<8x256xf32>
    %c72_111 = arith.constant 72 : index
    %c0_112 = arith.constant 0 : index
    %182 = vector.load %arg8[%c72_111, %c0_112] : memref<200x256xf32, #tpu.memory_space<vmem>>, vector<8x256xf32>
    tpu.vector_store %arg8[%c72_111, %c0_112], %181 {strides = array<i32>} : memref<200x256xf32, #tpu.memory_space<vmem>>, vector<8x256xf32>,
    %c2_i32_113 = arith.constant 2 : i32
    %183 = tpu.dynamic_rotate %132 by %c2_i32_113 dim 1 : vector<8x256xf32>, i32 -> vector<8x256xf32>
    %c10_114 = arith.constant 10 : index
    %c0_115 = arith.constant 0 : index
    %184 = vector.load %arg5[%c10_114, %c0_115] : memref<25x256xf32, #tpu.memory_space<vmem>>, vector<1x256xf32>
    %185 = vector.broadcast %184 : vector<1x256xf32> to vector<8x256xf32>
    %186 = arith.mulf %183, %185 : vector<8x256xf32>
    %c80_116 = arith.constant 80 : index
    %c0_117 = arith.constant 0 : index
    %187 = vector.load %arg8[%c80_116, %c0_117] : memref<200x256xf32, #tpu.memory_space<vmem>>, vector<8x256xf32>
    tpu.vector_store %arg8[%c80_116, %c0_117], %186 {strides = array<i32>} : memref<200x256xf32, #tpu.memory_space<vmem>>, vector<8x256xf32>,
    %c1_i32_118 = arith.constant 1 : i32
    %188 = tpu.dynamic_rotate %132 by %c1_i32_118 dim 1 : vector<8x256xf32>, i32 -> vector<8x256xf32>
    %c11_119 = arith.constant 11 : index
    %c0_120 = arith.constant 0 : index
    %189 = vector.load %arg5[%c11_119, %c0_120] : memref<25x256xf32, #tpu.memory_space<vmem>>, vector<1x256xf32>
    %190 = vector.broadcast %189 : vector<1x256xf32> to vector<8x256xf32>
    %191 = arith.mulf %188, %190 : vector<8x256xf32>
    %c88_121 = arith.constant 88 : index
    %c0_122 = arith.constant 0 : index
    %192 = vector.load %arg8[%c88_121, %c0_122] : memref<200x256xf32, #tpu.memory_space<vmem>>, vector<8x256xf32>
    tpu.vector_store %arg8[%c88_121, %c0_122], %191 {strides = array<i32>} : memref<200x256xf32, #tpu.memory_space<vmem>>, vector<8x256xf32>,
    %c12_123 = arith.constant 12 : index
    %c0_124 = arith.constant 0 : index
    %193 = vector.load %arg5[%c12_123, %c0_124] : memref<25x256xf32, #tpu.memory_space<vmem>>, vector<1x256xf32>
    %194 = vector.broadcast %193 : vector<1x256xf32> to vector<8x256xf32>
    %195 = arith.mulf %132, %194 : vector<8x256xf32>
    %c96_125 = arith.constant 96 : index
    %c0_126 = arith.constant 0 : index
    %196 = vector.load %arg8[%c96_125, %c0_126] : memref<200x256xf32, #tpu.memory_space<vmem>>, vector<8x256xf32>
    tpu.vector_store %arg8[%c96_125, %c0_126], %195 {strides = array<i32>} : memref<200x256xf32, #tpu.memory_space<vmem>>, vector<8x256xf32>,
    %c255_i32_127 = arith.constant 255 : i32
    %197 = tpu.dynamic_rotate %132 by %c255_i32_127 dim 1 : vector<8x256xf32>, i32 -> vector<8x256xf32>
    %c13_128 = arith.constant 13 : index
    %c0_129 = arith.constant 0 : index
    %198 = vector.load %arg5[%c13_128, %c0_129] : memref<25x256xf32, #tpu.memory_space<vmem>>, vector<1x256xf32>
    %199 = vector.broadcast %198 : vector<1x256xf32> to vector<8x256xf32>
    %200 = arith.mulf %197, %199 : vector<8x256xf32>
    %c104_130 = arith.constant 104 : index
    %c0_131 = arith.constant 0 : index
    %201 = vector.load %arg8[%c104_130, %c0_131] : memref<200x256xf32, #tpu.memory_space<vmem>>, vector<8x256xf32>
    tpu.vector_store %arg8[%c104_130, %c0_131], %200 {strides = array<i32>} : memref<200x256xf32, #tpu.memory_space<vmem>>, vector<8x256xf32>,
    %c254_i32_132 = arith.constant 254 : i32
    %202 = tpu.dynamic_rotate %132 by %c254_i32_132 dim 1 : vector<8x256xf32>, i32 -> vector<8x256xf32>
    %c14_133 = arith.constant 14 : index
    %c0_134 = arith.constant 0 : index
    %203 = vector.load %arg5[%c14_133, %c0_134] : memref<25x256xf32, #tpu.memory_space<vmem>>, vector<1x256xf32>
    %204 = vector.broadcast %203 : vector<1x256xf32> to vector<8x256xf32>
    %205 = arith.mulf %202, %204 : vector<8x256xf32>
    %c112_135 = arith.constant 112 : index
    %c0_136 = arith.constant 0 : index
    %206 = vector.load %arg8[%c112_135, %c0_136] : memref<200x256xf32, #tpu.memory_space<vmem>>, vector<8x256xf32>
    tpu.vector_store %arg8[%c112_135, %c0_136], %205 {strides = array<i32>} : memref<200x256xf32, #tpu.memory_space<vmem>>, vector<8x256xf32>,
    %c242_i32_137 = arith.constant 242 : i32
    %207 = tpu.dynamic_rotate %132 by %c242_i32_137 dim 1 : vector<8x256xf32>, i32 -> vector<8x256xf32>
    %c15_138 = arith.constant 15 : index
    %c0_139 = arith.constant 0 : index
    %208 = vector.load %arg5[%c15_138, %c0_139] : memref<25x256xf32, #tpu.memory_space<vmem>>, vector<1x256xf32>
    %209 = vector.broadcast %208 : vector<1x256xf32> to vector<8x256xf32>
    %210 = arith.mulf %207, %209 : vector<8x256xf32>
    %c120_140 = arith.constant 120 : index
    %c0_141 = arith.constant 0 : index
    %211 = vector.load %arg8[%c120_140, %c0_141] : memref<200x256xf32, #tpu.memory_space<vmem>>, vector<8x256xf32>
    tpu.vector_store %arg8[%c120_140, %c0_141], %210 {strides = array<i32>} : memref<200x256xf32, #tpu.memory_space<vmem>>, vector<8x256xf32>,
    %c241_i32_142 = arith.constant 241 : i32
    %212 = tpu.dynamic_rotate %132 by %c241_i32_142 dim 1 : vector<8x256xf32>, i32 -> vector<8x256xf32>
    %c16_143 = arith.constant 16 : index
    %c0_144 = arith.constant 0 : index
    %213 = vector.load %arg5[%c16_143, %c0_144] : memref<25x256xf32, #tpu.memory_space<vmem>>, vector<1x256xf32>
    %214 = vector.broadcast %213 : vector<1x256xf32> to vector<8x256xf32>
    %215 = arith.mulf %212, %214 : vector<8x256xf32>
    %c128_145 = arith.constant 128 : index
    %c0_146 = arith.constant 0 : index
    %216 = vector.load %arg8[%c128_145, %c0_146] : memref<200x256xf32, #tpu.memory_space<vmem>>, vector<8x256xf32>
    tpu.vector_store %arg8[%c128_145, %c0_146], %215 {strides = array<i32>} : memref<200x256xf32, #tpu.memory_space<vmem>>, vector<8x256xf32>,
    %c240_i32_147 = arith.constant 240 : i32
    %217 = tpu.dynamic_rotate %132 by %c240_i32_147 dim 1 : vector<8x256xf32>, i32 -> vector<8x256xf32>
    %c17_148 = arith.constant 17 : index
    %c0_149 = arith.constant 0 : index
    %218 = vector.load %arg5[%c17_148, %c0_149] : memref<25x256xf32, #tpu.memory_space<vmem>>, vector<1x256xf32>
    %219 = vector.broadcast %218 : vector<1x256xf32> to vector<8x256xf32>
    %220 = arith.mulf %217, %219 : vector<8x256xf32>
    %c136_150 = arith.constant 136 : index
    %c0_151 = arith.constant 0 : index
    %221 = vector.load %arg8[%c136_150, %c0_151] : memref<200x256xf32, #tpu.memory_space<vmem>>, vector<8x256xf32>
    tpu.vector_store %arg8[%c136_150, %c0_151], %220 {strides = array<i32>} : memref<200x256xf32, #tpu.memory_space<vmem>>, vector<8x256xf32>,
    %c239_i32_152 = arith.constant 239 : i32
    %222 = tpu.dynamic_rotate %132 by %c239_i32_152 dim 1 : vector<8x256xf32>, i32 -> vector<8x256xf32>
    %c18_153 = arith.constant 18 : index
    %c0_154 = arith.constant 0 : index
    %223 = vector.load %arg5[%c18_153, %c0_154] : memref<25x256xf32, #tpu.memory_space<vmem>>, vector<1x256xf32>
    %224 = vector.broadcast %223 : vector<1x256xf32> to vector<8x256xf32>
    %225 = arith.mulf %222, %224 : vector<8x256xf32>
    %c144_155 = arith.constant 144 : index
    %c0_156 = arith.constant 0 : index
    %226 = vector.load %arg8[%c144_155, %c0_156] : memref<200x256xf32, #tpu.memory_space<vmem>>, vector<8x256xf32>
    tpu.vector_store %arg8[%c144_155, %c0_156], %225 {strides = array<i32>} : memref<200x256xf32, #tpu.memory_space<vmem>>, vector<8x256xf32>,
    %c238_i32_157 = arith.constant 238 : i32
    %227 = tpu.dynamic_rotate %132 by %c238_i32_157 dim 1 : vector<8x256xf32>, i32 -> vector<8x256xf32>
    %c19_158 = arith.constant 19 : index
    %c0_159 = arith.constant 0 : index
    %228 = vector.load %arg5[%c19_158, %c0_159] : memref<25x256xf32, #tpu.memory_space<vmem>>, vector<1x256xf32>
    %229 = vector.broadcast %228 : vector<1x256xf32> to vector<8x256xf32>
    %230 = arith.mulf %227, %229 : vector<8x256xf32>
    %c152_160 = arith.constant 152 : index
    %c0_161 = arith.constant 0 : index
    %231 = vector.load %arg8[%c152_160, %c0_161] : memref<200x256xf32, #tpu.memory_space<vmem>>, vector<8x256xf32>
    tpu.vector_store %arg8[%c152_160, %c0_161], %230 {strides = array<i32>} : memref<200x256xf32, #tpu.memory_space<vmem>>, vector<8x256xf32>,
    %c226_i32_162 = arith.constant 226 : i32
    %232 = tpu.dynamic_rotate %132 by %c226_i32_162 dim 1 : vector<8x256xf32>, i32 -> vector<8x256xf32>
    %c20_163 = arith.constant 20 : index
    %c0_164 = arith.constant 0 : index
    %233 = vector.load %arg5[%c20_163, %c0_164] : memref<25x256xf32, #tpu.memory_space<vmem>>, vector<1x256xf32>
    %234 = vector.broadcast %233 : vector<1x256xf32> to vector<8x256xf32>
    %235 = arith.mulf %232, %234 : vector<8x256xf32>
    %c160_165 = arith.constant 160 : index
    %c0_166 = arith.constant 0 : index
    %236 = vector.load %arg8[%c160_165, %c0_166] : memref<200x256xf32, #tpu.memory_space<vmem>>, vector<8x256xf32>
    tpu.vector_store %arg8[%c160_165, %c0_166], %235 {strides = array<i32>} : memref<200x256xf32, #tpu.memory_space<vmem>>, vector<8x256xf32>,
    %c225_i32_167 = arith.constant 225 : i32
    %237 = tpu.dynamic_rotate %132 by %c225_i32_167 dim 1 : vector<8x256xf32>, i32 -> vector<8x256xf32>
    %c21_168 = arith.constant 21 : index
    %c0_169 = arith.constant 0 : index
    %238 = vector.load %arg5[%c21_168, %c0_169] : memref<25x256xf32, #tpu.memory_space<vmem>>, vector<1x256xf32>
    %239 = vector.broadcast %238 : vector<1x256xf32> to vector<8x256xf32>
    %240 = arith.mulf %237, %239 : vector<8x256xf32>
    %c168_170 = arith.constant 168 : index
    %c0_171 = arith.constant 0 : index
    %241 = vector.load %arg8[%c168_170, %c0_171] : memref<200x256xf32, #tpu.memory_space<vmem>>, vector<8x256xf32>
    tpu.vector_store %arg8[%c168_170, %c0_171], %240 {strides = array<i32>} : memref<200x256xf32, #tpu.memory_space<vmem>>, vector<8x256xf32>,
    %c224_i32_172 = arith.constant 224 : i32
    %242 = tpu.dynamic_rotate %132 by %c224_i32_172 dim 1 : vector<8x256xf32>, i32 -> vector<8x256xf32>
    %c22_173 = arith.constant 22 : index
    %c0_174 = arith.constant 0 : index
    %243 = vector.load %arg5[%c22_173, %c0_174] : memref<25x256xf32, #tpu.memory_space<vmem>>, vector<1x256xf32>
    %244 = vector.broadcast %243 : vector<1x256xf32> to vector<8x256xf32>
    %245 = arith.mulf %242, %244 : vector<8x256xf32>
    %c176_175 = arith.constant 176 : index
    %c0_176 = arith.constant 0 : index
    %246 = vector.load %arg8[%c176_175, %c0_176] : memref<200x256xf32, #tpu.memory_space<vmem>>, vector<8x256xf32>
    tpu.vector_store %arg8[%c176_175, %c0_176], %245 {strides = array<i32>} : memref<200x256xf32, #tpu.memory_space<vmem>>, vector<8x256xf32>,
    %c223_i32_177 = arith.constant 223 : i32
    %247 = tpu.dynamic_rotate %132 by %c223_i32_177 dim 1 : vector<8x256xf32>, i32 -> vector<8x256xf32>
    %c23_178 = arith.constant 23 : index
    %c0_179 = arith.constant 0 : index
    %248 = vector.load %arg5[%c23_178, %c0_179] : memref<25x256xf32, #tpu.memory_space<vmem>>, vector<1x256xf32>
    %249 = vector.broadcast %248 : vector<1x256xf32> to vector<8x256xf32>
    %250 = arith.mulf %247, %249 : vector<8x256xf32>
    %c184_180 = arith.constant 184 : index
    %c0_181 = arith.constant 0 : index
    %251 = vector.load %arg8[%c184_180, %c0_181] : memref<200x256xf32, #tpu.memory_space<vmem>>, vector<8x256xf32>
    tpu.vector_store %arg8[%c184_180, %c0_181], %250 {strides = array<i32>} : memref<200x256xf32, #tpu.memory_space<vmem>>, vector<8x256xf32>,
    %c222_i32_182 = arith.constant 222 : i32
    %252 = tpu.dynamic_rotate %132 by %c222_i32_182 dim 1 : vector<8x256xf32>, i32 -> vector<8x256xf32>
    %c24_183 = arith.constant 24 : index
    %c0_184 = arith.constant 0 : index
    %253 = vector.load %arg5[%c24_183, %c0_184] : memref<25x256xf32, #tpu.memory_space<vmem>>, vector<1x256xf32>
    %254 = vector.broadcast %253 : vector<1x256xf32> to vector<8x256xf32>
    %255 = arith.mulf %252, %254 : vector<8x256xf32>
    %c192_185 = arith.constant 192 : index
    %c0_186 = arith.constant 0 : index
    %256 = vector.load %arg8[%c192_185, %c0_186] : memref<200x256xf32, #tpu.memory_space<vmem>>, vector<8x256xf32>
    tpu.vector_store %arg8[%c192_185, %c0_186], %255 {strides = array<i32>} : memref<200x256xf32, #tpu.memory_space<vmem>>, vector<8x256xf32>,
    %c0_187 = arith.constant 0 : index
    %c0_188 = arith.constant 0 : index
    %257 = vector.load %arg3[%c0_187, %c0_188] : memref<8x200xf32, #tpu.memory_space<vmem>>, vector<8x200xf32>
    %c0_189 = arith.constant 0 : index
    %c0_190 = arith.constant 0 : index
    %258 = vector.load %arg8[%c0_189, %c0_190] : memref<200x256xf32, #tpu.memory_space<vmem>>, vector<200x256xf32>
    %cst_191 = arith.constant dense<0.000000e+00> : vector<8x256xf32>
    %259 = tpu.matmul %257, %258, %cst_191 {dimension_numbers = #tpu.dot_dimension_numbers<[1], [0], [0], [1], [0, 0, 1, 1], [], []>} : vector<8x200xf32>, vector<200x256xf32>, vector<8x256xf32> -> vector<8x256xf32>
    %c0_192 = arith.constant 0 : index
    %c0_193 = arith.constant 0 : index
    %260 = vector.load %arg4[%c0_192, %c0_193] : memref<8x1xf32, #tpu.memory_space<vmem>>, vector<8x1xf32>
    %261 = vector.broadcast %260 : vector<8x1xf32> to vector<8x256xf32>
    %262 = arith.addf %259, %261 : vector<8x256xf32>
    %263 = arith.addf %262, %0 : vector<8x256xf32>
    %cst_194 = arith.constant 0.000000e+00 : f32
    %264 = vector.broadcast %cst_194 : f32 to vector<8x256xf32>
    %265 = arith.maximumf %263, %264 : vector<8x256xf32>
    %c0_195 = arith.constant 0 : index
    %c0_196 = arith.constant 0 : index
    %266 = vector.load %arg7[%c0_195, %c0_196] : memref<8x256xf32, #tpu.memory_space<vmem>>, vector<8x256xf32>
    tpu.vector_store %arg7[%c0_195, %c0_196], %265 {strides = array<i32>} : memref<8x256xf32, #tpu.memory_space<vmem>>, vector<8x256xf32>,
    return
  }
  func.func @transform_0(%arg0: i32) -> (i32, i32) {
    %c0_i32 = arith.constant 0 : i32
    %c0_i32_0 = arith.constant 0 : i32
    %c0_i32_1 = arith.constant 0 : i32
    return %c0_i32, %c0_i32_0 : i32, i32
  }
  func.func @transform_1(%arg0: i32) -> (i32, i32) {
    %c0_i32 = arith.constant 0 : i32
    %c0_i32_0 = arith.constant 0 : i32
    %c0_i32_1 = arith.constant 0 : i32
    return %c0_i32, %c0_i32_0 : i32, i32
  }
  func.func @transform_2(%arg0: i32) -> (i32, i32) {
    %c0_i32 = arith.constant 0 : i32
    %c0_i32_0 = arith.constant 0 : i32
    %c0_i32_1 = arith.constant 0 : i32
    return %c0_i32, %c0_i32_0 : i32, i32
  }
  func.func @transform_3(%arg0: i32) -> (i32, i32) {
    %c0_i32 = arith.constant 0 : i32
    %c0_i32_0 = arith.constant 0 : i32
    %c0_i32_1 = arith.constant 0 : i32
    return %c0_i32, %c0_i32_0 : i32, i32
  }
  func.func @transform_4(%arg0: i32) -> (i32, i32) {
    %c0_i32 = arith.constant 0 : i32
    %c0_i32_0 = arith.constant 0 : i32
    %c0_i32_1 = arith.constant 0 : i32
    return %c0_i32, %c0_i32_0 : i32, i32
  }
  func.func @transform_5(%arg0: i32) -> (i32, i32) {
    %c0_i32 = arith.constant 0 : i32
    %c0_i32_0 = arith.constant 0 : i32
    return %c0_i32, %arg0 : i32, i32
  }
  func.func @transform_6(%arg0: i32) -> (i32, i32) {
    %c0_i32 = arith.constant 0 : i32
    %c0_i32_0 = arith.constant 0 : i32
    return %c0_i32, %arg0 : i32, i32
  }
}

</mosaic_0001>

<bundles_post_ra>
// kernel: tpu_custom_call.1
= control target key start
LH: loop header
LB: loop body
LE: loop exit
PB: predicated region body
PF: predicated region fallthrough
CT: control target
= control target key end

     0   :  { %11 = vsyncpa [#allocation4], 0  ;;  %s2986_s0 = inlined_call_operand.hbm [shape: f32[8,200], index: 0, kind: input, shape index: {}]   ;;  %s2987_s1 = inlined_call_operand.vmem [shape: f32[8,1], index: 1, kind: input, shape index: {}]   ;;  %s2988_s2 = inlined_call_operand.hbm [shape: f32[8,200], index: 2, kind: input, shape index: {}]   ;;  %s2989_s3 = inlined_call_operand.vmem [shape: f32[8,1], index: 3, kind: input, shape index: {}]   ;;  %s2990_s4 = inlined_call_operand.hbm [shape: f32[25,256], index: 4, kind: input, shape index: {}]   ;;  %s2991_s5 = inlined_call_operand.vmem [shape: f32[8,512], index: 5, kind: input, shape index: {}]   ;;  %s2992_s6 = inlined_call_operand.hbm [shape: f32[8,512], index: 6, kind: output, shape index: {}]  }
   0x1   :  { %12 = vsyncpa [#allocation7], 0 }
   0x2   :  { %13 = vsyncpa [#allocation5], 0 }
   0x3   :  { %15 = vsyncpa [#allocation5 + $0x1], 0  ;;  %s2250_s21 = smov 0   ;;  %s2252_s22 = smov 0  }
   0x4   :  { %s2254_s23 = smov 0   ;;  %s2256_s24 = smov 0  }
   0x5 LB: > { %s2271_s25 = sadd.s32 4294967295, %s2182_s24   ;;  %s1811_s26 = sadd.s32 4294967294, %s2182_s24   ;;  %s2182_s24 = sphi %s2256_s24, %s3074_s24   ;;  %s2178_s23 = sphi %s2254_s23, %s3073_s23   ;;  %s2174_s22 = sphi %s2252_s22, %s3072_s22   ;;  %s2170_s21 = sphi %s2250_s21, %s3071_s21  }
   0x6   : > { %s2275_s27 = sadd.s32 1, %s2182_s24   ;;  %s159_s28 = sadd.s32 1, %s2178_s23 }
   0x7   : > { %s156_s29 = ssub.s32 %s2182_s24, %s2275_s27  ;;  %p169_p0 = scmp.ne.s32.totalorder %s2178_s23, %s2174_s22 }
   0x8   : > { %p157_p1 = scmp.eq.s32.totalorder %s156_s29, 0  ;;  %p170_p2 = scmp.eq.s32.totalorder %s2271_s25, 1 }
   0x9   : > { %p175_p3 = scmp.ne.s32.totalorder %s2174_s22, %s2170_s21  ;;  %p176_p4 = scmp.eq.s32.totalorder %s1811_s26, 1 }
   0xa   : > { %s2286_s30 = scalar_select %p157_p1, %s2178_s23, %s159_s28  }
   0xb   : > { %p2288_p5 = por %p170_p2, %p169_p0  ;;  %p2292_p6 = por %p176_p4, %p175_p3 }
   0xc   : > { %p1812_p7 = scmp.ge.s32.totalorder %s2182_s24, 1  ;;  %p183_p8 = scmp.lt.s32.totalorder %s2182_s24, 3 }
   0xd   : > { %s3029_s7 = scalar_select %p2288_p5, 1, 0 }
   0xe   : > { %s3030_s8 = scalar_select %p2292_p6, 1, 0 }
   0xf   : > { %p2993_p9 = scmp.eq.s32.totalorder %s2271_s25, 0  ;;  %p2299_p10 = pnand %p1812_p7, %p183_p8 }
  0x10   : > { %s2184_s10 = smov [#allocation6]   ;;  %s2185_s12 = smov [#allocation3]  }
  0x11   : > { %s3031_s9 = scalar_select %p2299_p10, 1, 0 }
  0x12   : > { %s210_s11 = sshll.u32 %s2184_s10, 4  ;;  %p1942_p11 = pneg %p2299_p10  ;;  %s211_s11 = int_to_ptr.vmem [resolvable:$true] %s210_s11 }
  0x13   : > { %s196_s13 = sshll.u32 %s2185_s12, 4  ;;  %s2186_s15 = smov [#allocation8]   ;;  %s2311_s13 = int_to_ptr.vmem [resolvable:$true] %s196_s13 }
  0x14   : > { %p2307_p12 = pnand %p2993_p9, %p1942_p11  ;;  %s223_s16 = sshll.u32 %s2186_s15, 4  ;;  %s2313_s16 = int_to_ptr.vmem [resolvable:$true] %s223_s16 }
  0x15   : > { %s2028_s19 = scalar_lea.hbm %s2988_s2, 256 }
  0x16   : > { %p2029_p13 = scmp.ne.s32.totalorder %s2988_s2, %s2028_s19  ;;  %p2323_p0 = pneg %p2307_p12 }
  0x17   : > { %p2035_p3 = scmp.lt.u32.totalorder %s2028_s19, %s2988_s2 }
  0x18   : > { %p2031_p1 = pnand %p2323_p0, %p2029_p13 }
  0x1a   : > { %p2032_p2 = pneg %p2031_p1 }
  0x1c   : > { %p2037_p4 = pnand %p2035_p3, %p2032_p2 }
  0x1e   : > { %2040 = shalt.err (!%p2037_p4)
}
  0x1f   : > { %s2041_s12 = scalar_lea.vmem %s211_s11, 256  ;;  %p2049_p9 = scmp.lt.s32.totalorder %s211_s11, %s211_s11 }
  0x20   : > { %p2042_p7 = scmp.ne.s32.totalorder %s211_s11, %s2041_s12  ;;  %p2050_p6 = scmp.lt.s32.totalorder %s2041_s12, %s2041_s12 }
  0x22   : > { %p2044_p8 = pnand %p2042_p7, %p2323_p0  ;;  %p2051_p5 = por %p2050_p6, %p2049_p9 }
  0x24   : > { %p2045_p11 = pneg %p2044_p8 }
  0x26   : > { %p2052_p10 = pnand %p2051_p5, %p2045_p11 }
  0x28   : > { %2055 = shalt.err (!%p2052_p10)
}
  0x29   : > { %1948 = dma.hbm_to_vmem [thread:$0]  (!%p2307_p12), %s2988_s2, 256, %s211_s11, [#allocation7]  }
  0x2a   : > { %s2056_s20 = scalar_lea.hbm %s2986_s0, 256 }
  0x2b   : > { %p2057_p13 = scmp.ne.s32.totalorder %s2986_s0, %s2056_s20  ;;  %p2063_p5 = scmp.lt.u32.totalorder %s2056_s20, %s2986_s0 }
  0x2d   : > { %p2059_p1 = pnand %p2057_p13, %p2323_p0 }
  0x2f   : > { %p2060_p6 = pneg %p2059_p1 }
  0x31   : > { %p2065_p9 = pnand %p2063_p5, %p2060_p6 }
  0x33   : > { %2068 = shalt.err (!%p2065_p9)
}
  0x34   : > { %s2069_s11 = scalar_lea.vmem %s2311_s13, 256  ;;  %p2077_p4 = scmp.lt.s32.totalorder %s2311_s13, %s2311_s13 }
  0x35   : > { %p2070_p10 = scmp.ne.s32.totalorder %s2311_s13, %s2069_s11  ;;  %p2078_p7 = scmp.lt.s32.totalorder %s2069_s11, %s2069_s11 }
  0x37   : > { %p2072_p2 = pnand %p2070_p10, %p2323_p0  ;;  %p2079_p8 = por %p2078_p7, %p2077_p4 }
  0x39   : > { %p2073_p3 = pneg %p2072_p2 }
  0x3b   : > { %p2080_p11 = pnand %p2079_p8, %p2073_p3 }
  0x3d   : > { %2083 = shalt.err (!%p2080_p11)
}
  0x3e   : > { %1945 = dma.hbm_to_vmem [thread:$0]  (!%p2307_p12), %s2986_s0, 256, %s2311_s13, [#allocation4]  }
  0x3f   : > { %s2084_s20 = scalar_lea.hbm %s2990_s4, 1024 }
  0x40   : > { %p2085_p13 = scmp.ne.s32.totalorder %s2990_s4, %s2084_s20  ;;  %p2091_p5 = scmp.lt.u32.totalorder %s2084_s20, %s2990_s4 }
  0x42   : > { %p2087_p1 = pnand %p2085_p13, %p2323_p0 }
  0x44   : > { %p2088_p6 = pneg %p2087_p1 }
  0x46   : > { %p2093_p9 = pnand %p2091_p5, %p2088_p6 }
  0x48   : > { %2096 = shalt.err (!%p2093_p9)
}
  0x49   : > { %s2097_s13 = scalar_lea.vmem %s2313_s16, 1024  ;;  %p2105_p4 = scmp.lt.s32.totalorder %s2313_s16, %s2313_s16 }
  0x4a   : > { %p2098_p10 = scmp.ne.s32.totalorder %s2313_s16, %s2097_s13  ;;  %p2106_p7 = scmp.lt.s32.totalorder %s2097_s13, %s2097_s13 }
  0x4c   : > { %p2100_p2 = pnand %p2098_p10, %p2323_p0  ;;  %p2107_p8 = por %p2106_p7, %p2105_p4 }
  0x4e   : > { %p2101_p3 = pneg %p2100_p2 }
  0x50   : > { %p2108_p11 = pnand %p2107_p8, %p2101_p3 }
  0x52   : > { %2111 = shalt.err (!%p2108_p11)
}
  0x53   : > { %s2187_s11 = smov 256   ;;  %s2188_s15 = smov 16  }
  0x54   : > { %1951 = dma.hbm_to_vmem [thread:$0]  (!%p2307_p12), %s2990_s4, 1024, %s2313_s16, [#allocation7], %s2187_s11, %s2187_s11, %s2188_s15  }
  0x55   : > { %p3034_p13 = scmp.ne.s32.totalorder %s3031_s9, 0 }
  0x56   : > { %p3035_p0 = scmp.eq.s32.totalorder (!%p3034_p13), %s2271_s25, 0 }
  0x57   : > { %248 = sbr.rel (%p3034_p13) target bundleno = 986 (0x3da), region = 44 }
  0x5e   : > { %2157 = dma.done.wait (%p3035_p0), [#allocation4], 256   ;;  %p3036_p1 = pmov %p3035_p0 }
  0x5f   : > { %p3037_p6 = pmov %p3035_p0 }
  0x60   : > { %2159 = vsyncadd (%p3036_p1), [#allocation4], 4294967040 }
  0x61   : > { %2161 = dma.done.wait (%p3037_p6), [#allocation7], 1280   ;;  %p3038_p5 = pmov %p3035_p0 }
  0x62   : > { %s1822_s14 = sshll.u32 %s2271_s25, 1  ;;  %s2189_s20 = smov 33   ;;  %v890_v2 = vld [vmem:[#allocation3 + $0x8] sm:$0xff]  ;;  %vm947_vm0 = vcmask 588800   ;;  %v2211_v3 = vmov 0   ;;  %v941_v4 = vld [vmem:[%s2987_s1] sm:$0xff]  ;;  %v299_v5 = vlaneseq }
  0x63   : > { %2163 = vsyncadd (%p3038_p5), [#allocation7], 4294966016  ;;  %p287_p9 = scmp.lt.s32.totalorder %s1822_s14, 3  ;;  %s2190_s26 = smov 34   ;;  %1824 = vmatprep.mubr.msk.f32.mxu0 %vm947_vm0, %v890_v2  ;;  %2025 = vset.pattern.permute.xlu0 %v2211_v3 }
  0x64   : > { %s2191_s29 = smov 32   ;;  %s2192_s10 = smov 31   ;;  %v307_v6 = vshrl.u32 %v299_v5, 7  ;;  %v2507_v7 = vand.u32 127, %v299_v5 }
  0x65   : > { %s3076_s14 = smov (!%p287_p9, %s1822_s14), 3  ;;  %s2193_s12 = smov 30   ;;  %v328_v10 = vld [vmem:[#allocation8 + $0x1] ss:$8 sm:$0x3] }
  0x66   : > { %s1823_s16 = sshll.u32 %s3076_s14, 3  ;;  %s2194_s13 = smov 18   ;;  %v2509_v8 = vsub.s32 0, %v307_v6  ;;  %v2511_v9 = vsub.s32 1, %v307_v6  ;;  %vm324_vm1 = vcmp.lt.s32.totalorder %v2507_v7, 33  ;;  %vm301_vm2 = vcmp.lt.s32.totalorder %v2507_v7, 34 }
  0x67   : > { %s2399_s19 = scalar_lea.vmem %s2991_s5, %s1823_s16  ;;  %s2195_s11 = smov 17   ;;  %v304_v11 = vld [vmem:[#allocation8] ss:$8 sm:$0x3]  ;;  %vm348_vm3 = vcmp.lt.s32.totalorder %v2507_v7, 32  ;;  %vm372_vm4 = vcmp.lt.s32.totalorder %v2507_v7, 31 }
  0x68   : > { %v2402_v0 = vld [vmem:[%s2399_s19] sm:$0xff]  ;;  %v2409_v1 = vld [vmem:[%s2399_s19 + $0x8] sm:$0xff]  ;;  %s2196_s15 = smov 16   ;;  %s2197_s17 = smov 15   ;;  %v333_v14 = vrot.slane %v328_v10, %v2509_v8  ;;  %v309_v15 = vrot.slane %v304_v11, %v2509_v8  ;;  %v313_v16 = vrot.slane %v304_v11, %v2511_v9  ;;  %v337_v17 = vrot.slane %v328_v10, %v2511_v9 }
  0x69   : > { %320 = vrot.lane.b32.xlu1 %v2402_v0, %s2189_s20  ;;  %295 = vrot.lane.b32.xlu0 %v2402_v0, %s2190_s26  ;;  %s2198_s18 = smov 14   ;;  %s2996_s14 = smov 2   ;;  %v352_v28 = vld [vmem:[#allocation8 + $0x2] ss:$8 sm:$0x3]  ;;  %vm396_vm5 = vcmp.lt.s32.totalorder %v2507_v7, 30 }
  0x6a   : > { %s2998_s16 = smov 1   ;;  %s3000_s28 = smov 127   ;;  %v376_v29 = vld [vmem:[#allocation8 + $0x3] ss:$8 sm:$0x3]  ;;  %v357_v34 = vrot.slane %v352_v28, %v2509_v8  ;;  %v361_v35 = vrot.slane %v352_v28, %v2511_v9  ;;  %vm420_vm6 = vcmp.lt.s32.totalorder %v2507_v7, 18 }
  0x6b   : > { %s3002_s9 = smov 126   ;;  %v381_v36 = vrot.slane %v376_v29, %v2509_v8  ;;  %v385_v37 = vrot.slane %v376_v29, %v2511_v9  ;;  %v400_v48 = vld [vmem:[#allocation8 + $0x4] ss:$8 sm:$0x3]  ;;  %vm444_vm7 = vcmp.lt.s32.totalorder %v2507_v7, 17  ;;  %vm468_vm8 = vcmp.lt.s32.totalorder %v2507_v7, 16 }
  0x6c   : > { %v424_v49 = vld [vmem:[#allocation8 + $0x5] ss:$8 sm:$0x3]  ;;  %v405_v54 = vrot.slane %v400_v48, %v2509_v8  ;;  %v409_v55 = vrot.slane %v400_v48, %v2511_v9  ;;  %v448_v6 = vld [vmem:[#allocation8 + $0x6] ss:$8 sm:$0x3] }
  0x6d   : > { %322 = vrot.lane.b32.xlu1 %v2409_v1, %s2189_s20  ;;  %297 = vrot.lane.b32.xlu0 %v2409_v1, %s2190_s26  ;;  %v429_v56 = vrot.slane %v424_v49, %v2509_v8  ;;  %v433_v57 = vrot.slane %v424_v49, %v2511_v9  ;;  %v472_v10 = vld [vmem:[#allocation8 + $0x7] ss:$8 sm:$0x3]  ;;  %v496_v29 = vld [vmem:[#allocation8 + $0x10] ss:$8 sm:$0x3] }
  0x6e   : > { %vm492_vm9 = vcmp.lt.s32.totalorder %v2507_v7, 15  ;;  %vm516_vm10 = vcmp.lt.s32.totalorder %v2507_v7, 14  ;;  %v544_v49 = vld [vmem:[#allocation8 + $0x12] ss:$8 sm:$0x3]  ;;  %vm540_vm11 = vcmp.lt.s32.totalorder %v2507_v7, 2 }
  0x6f   : > { %vm564_vm12 = vcmp.lt.s32.totalorder %v2507_v7, 1  ;;  %vm3020_vm13 = vcmp.lt.s32.totalorder %v2507_v7, 127  ;;  %vm3021_vm14 = vcmp.lt.s32.totalorder %v2507_v7, 126  ;;  %vm3022_vm15 = vcmp.lt.s32.totalorder %v2507_v7, 114  ;;  %p3069_p10 = scmp.ne.s32.totalorder %s3029_s7, 0 }
  0x71   : > { %346 = vrot.lane.b32.xlu1 %v2409_v1, %s2191_s29  ;;  %344 = vrot.lane.b32.xlu0 %v2402_v0, %s2191_s29 }
  0x75   : > { %370 = vrot.lane.b32.xlu1 %v2409_v1, %s2192_s10  ;;  %368 = vrot.lane.b32.xlu0 %v2402_v0, %s2192_s10 }
  0x79   : > { %394 = vrot.lane.b32.xlu1 %v2409_v1, %s2193_s12  ;;  %392 = vrot.lane.b32.xlu0 %v2402_v0, %s2193_s12 }
  0x7d   : > { %418 = vrot.lane.b32.xlu1 %v2409_v1, %s2194_s13  ;;  %416 = vrot.lane.b32.xlu0 %v2402_v0, %s2194_s13 }
  0x81   : > { %442 = vrot.lane.b32.xlu1 %v2409_v1, %s2195_s11  ;;  %440 = vrot.lane.b32.xlu0 %v2402_v0, %s2195_s11 }
  0x85   : > { %466 = vrot.lane.b32.xlu1 %v2409_v1, %s2196_s15  ;;  %464 = vrot.lane.b32.xlu0 %v2402_v0, %s2196_s15 }
  0x89   : > { %490 = vrot.lane.b32.xlu1 %v2409_v1, %s2197_s17  ;;  %488 = vrot.lane.b32.xlu0 %v2402_v0, %s2197_s17 }
  0x8d   : > { %514 = vrot.lane.b32.xlu1 %v2409_v1, %s2198_s18  ;;  %512 = vrot.lane.b32.xlu0 %v2402_v0, %s2198_s18 }
  0x91   : > { %538 = vrot.lane.b32.xlu1 %v2409_v1, %s2996_s14  ;;  %536 = vrot.lane.b32.xlu0 %v2402_v0, %s2996_s14  ;;  %s3004_s14 = smov 114  }
  0x95   : > { %562 = vrot.lane.b32.xlu1 %v2409_v1, %s2998_s16  ;;  %560 = vrot.lane.b32.xlu0 %v2402_v0, %s2998_s16  ;;  %s3006_s16 = smov 113  }
  0x99   : > { %603 = vrot.lane.b32.xlu1 %v2409_v1, %s3000_s28  ;;  %601 = vrot.lane.b32.xlu0 %v2402_v0, %s3000_s28  ;;  %s3008_s28 = smov 112  }
  0x9d   : > { %627 = vrot.lane.b32.xlu1 %v2409_v1, %s3002_s9  ;;  %625 = vrot.lane.b32.xlu0 %v2402_v0, %s3002_s9  ;;  %s3010_s9 = smov 111  }
  0xa1   : > { %651 = vrot.lane.b32.xlu1 %v2409_v1, %s3004_s14  ;;  %649 = vrot.lane.b32.xlu0 %v2402_v0, %s3004_s14  ;;  %s3018_s14 = smov 110  }
  0xa5   : > { %675 = vrot.lane.b32.xlu1 %v2409_v1, %s3006_s16  ;;  %673 = vrot.lane.b32.xlu0 %v2402_v0, %s3006_s16  ;;  %s3012_s16 = smov 98  }
  0xa9   : > { %699 = vrot.lane.b32.xlu1 %v2409_v1, %s3008_s28  ;;  %697 = vrot.lane.b32.xlu0 %v2402_v0, %s3008_s28  ;;  %s3014_s28 = smov 97  }
  0xad   : > { %723 = vrot.lane.b32.xlu1 %v2409_v1, %s3010_s9  ;;  %721 = vrot.lane.b32.xlu0 %v2402_v0, %s3010_s9  ;;  %s3016_s9 = smov 96  }
  0xb1   : > { %747 = vrot.lane.b32.xlu1 %v2409_v1, %s3018_s14  ;;  %745 = vrot.lane.b32.xlu0 %v2402_v0, %s3018_s14  ;;  %s3049_s14 = smov 97  }
  0xb5   : > { %771 = vrot.lane.b32.xlu1 %v2409_v1, %s3012_s16  ;;  %769 = vrot.lane.b32.xlu0 %v2402_v0, %s3012_s16  ;;  %s2212_s16 = smov 95  }
  0xb9   : > { %795 = vrot.lane.b32.xlu1 %v2409_v1, %s3014_s28  ;;  %793 = vrot.lane.b32.xlu0 %v2402_v0, %s3014_s28  ;;  %s2213_s28 = smov 94  }
  0xbd   : > { %819 = vrot.lane.b32.xlu1 %v2409_v1, %s3016_s9  ;;  %817 = vrot.lane.b32.xlu0 %v2402_v0, %s3016_s9  ;;  %s3050_s9 = smov 96  }
  0xc1   : > { %843 = vrot.lane.b32.xlu1 %v2409_v1, %s2212_s16  ;;  %841 = vrot.lane.b32.xlu0 %v2402_v0, %s2212_s16 }
  0xc5   : > { %867 = vrot.lane.b32.xlu1 %v2409_v1, %s2213_s28  ;;  %865 = vrot.lane.b32.xlu0 %v2402_v0, %s2213_s28 }
  0xc9   : > { %944 = vperm.xlu0 %2025, %v941_v4  }
  0xdb   : > { %v321_v12 = vpop.permute.xlu1 %320  ;;  %v296_v13 = vpop.permute.xlu0 %295 }
  0xdf   : > { %v323_v18 = vpop.permute.xlu1 %322  ;;  %v298_v19 = vpop.permute.xlu0 %297 }
  0xe0   : > { %v325_v20 = vsel %vm324_vm1, %v321_v12, %v323_v18  ;;  %v326_v21 = vsel %vm324_vm1, %v323_v18, %v321_v12  ;;  %v302_v22 = vsel %vm301_vm2, %v296_v13, %v298_v19  ;;  %v303_v23 = vsel %vm301_vm2, %v298_v19, %v296_v13 }
  0xe1   : > { %v340_v24 = vmul.f32 %v333_v14, %v326_v21  ;;  %v316_v25 = vmul.f32 %v309_v15, %v303_v23  ;;  %v317_v26 = vmul.f32 %v313_v16, %v302_v22  ;;  %v341_v27 = vmul.f32 %v337_v17, %v325_v20 }
  0xe2   : > { %v453_v15 = vrot.slane %v448_v6, %v2509_v8  ;;  %v457_v16 = vrot.slane %v448_v6, %v2511_v9  ;;  %v477_v17 = vrot.slane %v472_v10, %v2509_v8  ;;  %v481_v18 = vrot.slane %v472_v10, %v2511_v9 }
  0xe3   : > { %v347_v30 = vpop.permute.xlu1 %346  ;;  %v345_v31 = vpop.permute.xlu0 %344  ;;  %v1832_v32 = vpack.c.bf16 %v341_v27, %v317_v26  ;;  %v1834_v33 = vpack.c.bf16 %v340_v24, %v316_v25 }
  0xe4   : > { %v349_v38 = vsel %vm348_vm3, %v345_v31, %v347_v30  ;;  %v350_v39 = vsel %vm348_vm3, %v347_v30, %v345_v31  ;;  %v520_v30 = vld [vmem:[#allocation8 + $0x11] ss:$8 sm:$0x3] }
  0xe5   : > { %1833 = vmatprep.subr.bf16.mxu0 %v1832_v32  ;;  %v364_v44 = vmul.f32 %v357_v34, %v350_v39  ;;  %v365_v45 = vmul.f32 %v361_v35, %v349_v38  ;;  %v501_v35 = vrot.slane %v496_v29, %v2509_v8  ;;  %v529_v38 = vrot.slane %v520_v30, %v2511_v9 }
  0xe6   : > { %1835 = vmatpush1.bf16.msra.mxu0 %v1834_v33 }
  0xe7   : > { %v371_v40 = vpop.permute.xlu1 %370  ;;  %v369_v41 = vpop.permute.xlu0 %368 }
  0xe8   : > { %v373_v42 = vsel %vm372_vm4, %v369_v41, %v371_v40  ;;  %v374_v43 = vsel %vm372_vm4, %v371_v40, %v369_v41 }
  0xe9   : > { %v388_v46 = vmul.f32 %v381_v36, %v374_v43  ;;  %v389_v47 = vmul.f32 %v385_v37, %v373_v42  ;;  %v505_v36 = vrot.slane %v496_v29, %v2511_v9  ;;  %v525_v37 = vrot.slane %v520_v30, %v2509_v8 }
  0xeb   : > { %v395_v50 = vpop.permute.xlu1 %394  ;;  %v393_v51 = vpop.permute.xlu0 %392  ;;  %v1836_v52 = vpack.c.bf16 %v389_v47, %v365_v45  ;;  %v1838_v53 = vpack.c.bf16 %v388_v46, %v364_v44 }
  0xec   : > { %v397_v58 = vsel %vm396_vm5, %v393_v51, %v395_v50  ;;  %v398_v59 = vsel %vm396_vm5, %v395_v50, %v393_v51  ;;  %v568_v50 = vld [vmem:[#allocation8 + $0x13] ss:$8 sm:$0x3] }
  0xed   : > { %1837 = vmatprep.subr.bf16.mxu0 %v1836_v52  ;;  %v412_v2 = vmul.f32 %v405_v54, %v398_v59  ;;  %v413_v3 = vmul.f32 %v409_v55, %v397_v58  ;;  %v549_v55 = vrot.slane %v544_v49, %v2509_v8  ;;  %v573_v58 = vrot.slane %v568_v50, %v2509_v8 }
  0xee   : > { %1839 = vmatpush1.bf16.msra.mxu0 %v1838_v53  ;;  %v577_v59 = vrot.slane %v568_v50, %v2511_v9 }
  0xef   : > { %v419_v60 = vpop.permute.xlu1 %418  ;;  %v417_v61 = vpop.permute.xlu0 %416 }
  0xf0   : > { %v421_v62 = vsel %vm420_vm6, %v417_v61, %v419_v60  ;;  %v422_v63 = vsel %vm420_vm6, %v419_v60, %v417_v61  ;;  %v609_v60 = vld [vmem:[#allocation8 + $0x15] ss:$8 sm:$0x3] }
  0xf1   : > { %v436_v4 = vmul.f32 %v429_v56, %v422_v63  ;;  %v437_v5 = vmul.f32 %v433_v57, %v421_v62  ;;  %v585_v56 = vld [vmem:[#allocation8 + $0x14] ss:$8 sm:$0x3]  ;;  %v553_v57 = vrot.slane %v544_v49, %v2511_v9  ;;  %v614_v10 = vrot.slane %v609_v60, %v2509_v8 }
  0xf3   : > { %v443_v11 = vpop.permute.xlu1 %442  ;;  %v441_v12 = vpop.permute.xlu0 %440  ;;  %v1840_v13 = vpack.c.bf16 %v437_v5, %v413_v3  ;;  %v1842_v14 = vpack.c.bf16 %v436_v4, %v412_v2  ;;  %v594_v3 = vrot.slane %v585_v56, %v2511_v9  ;;  %v590_v4 = vrot.slane %v585_v56, %v2509_v8 }
  0xf4   : > { %v445_v19 = vsel %vm444_vm7, %v441_v12, %v443_v11  ;;  %v446_v20 = vsel %vm444_vm7, %v443_v11, %v441_v12  ;;  %v618_v11 = vrot.slane %v609_v60, %v2511_v9 }
  0xf5   : > { %1841 = vmatprep.subr.bf16.mxu0 %v1840_v13  ;;  %v460_v25 = vmul.f32 %v453_v15, %v446_v20  ;;  %v461_v26 = vmul.f32 %v457_v16, %v445_v19  ;;  %v598_v20 = vmul.f32 %v594_v3, %v2409_v1  ;;  %v753_v3 = vld [vmem:[#allocation8 + $0x23] ss:$8 sm:$0x3] }
  0xf6   : > { %1843 = vmatpush1.bf16.msra.mxu0 %v1842_v14 }
  0xf7   : > { %v467_v21 = vpop.permute.xlu1 %466  ;;  %v465_v22 = vpop.permute.xlu0 %464 }
  0xf8   : > { %v469_v23 = vsel %vm468_vm8, %v465_v22, %v467_v21  ;;  %v470_v24 = vsel %vm468_vm8, %v467_v21, %v465_v22  ;;  %v597_v21 = vmul.f32 %v590_v4, %v2402_v0 }
  0xf9   : > { %v484_v27 = vmul.f32 %v477_v17, %v470_v24  ;;  %v485_v28 = vmul.f32 %v481_v18, %v469_v23 }
  0xfb   : > { %v491_v31 = vpop.permute.xlu1 %490  ;;  %v489_v32 = vpop.permute.xlu0 %488  ;;  %v1844_v33 = vpack.c.bf16 %v485_v28, %v461_v26  ;;  %v1846_v34 = vpack.c.bf16 %v484_v27, %v460_v25  ;;  %v633_v26 = vld [vmem:[#allocation8 + $0x16] ss:$8 sm:$0x3]  ;;  %v657_v27 = vld [vmem:[#allocation8 + $0x17] ss:$8 sm:$0x3] }
  0xfc   : > { %v493_v39 = vsel %vm492_vm9, %v489_v32, %v491_v31  ;;  %v494_v40 = vsel %vm492_vm9, %v491_v31, %v489_v32  ;;  %v638_v0 = vrot.slane %v633_v26, %v2509_v8  ;;  %v642_v31 = vrot.slane %v633_v26, %v2511_v9  ;;  %v801_v26 = vld [vmem:[#allocation8 + $0x25] ss:$8 sm:$0x3] }
  0xfd   : > { %1845 = vmatprep.subr.bf16.mxu0 %v1844_v33  ;;  %v508_v45 = vmul.f32 %v501_v35, %v494_v40  ;;  %v509_v46 = vmul.f32 %v505_v36, %v493_v39  ;;  %v662_v32 = vrot.slane %v657_v27, %v2509_v8  ;;  %v666_v33 = vrot.slane %v657_v27, %v2511_v9 }
  0xfe   : > { %1847 = vmatpush1.bf16.msra.mxu0 %v1846_v34 }
  0xff   : > { %v515_v41 = vpop.permute.xlu1 %514  ;;  %v513_v42 = vpop.permute.xlu0 %512 }
 0x100   : > { %v517_v43 = vsel %vm516_vm10, %v513_v42, %v515_v41  ;;  %v518_v44 = vsel %vm516_vm10, %v515_v41, %v513_v42 }
 0x101   : > { %v532_v47 = vmul.f32 %v525_v37, %v518_v44  ;;  %v533_v48 = vmul.f32 %v529_v38, %v517_v43  ;;  %v681_v44 = vld [vmem:[#allocation8 + $0x20] ss:$8 sm:$0x3] }
 0x102   : > { %v686_v50 = vrot.slane %v681_v44, %v2509_v8 }
 0x103   : > { %v539_v51 = vpop.permute.xlu1 %538  ;;  %v537_v52 = vpop.permute.xlu0 %536  ;;  %v1848_v53 = vpack.c.bf16 %v533_v48, %v509_v46  ;;  %v1850_v54 = vpack.c.bf16 %v532_v47, %v508_v45  ;;  %v705_v45 = vld [vmem:[#allocation8 + $0x21] ss:$8 sm:$0x3] }
 0x104   : > { %v541_v61 = vsel %vm540_vm11, %v537_v52, %v539_v51  ;;  %v542_v62 = vsel %vm540_vm11, %v539_v51, %v537_v52  ;;  %v690_v51 = vrot.slane %v681_v44, %v2511_v9  ;;  %v710_v52 = vrot.slane %v705_v45, %v2509_v8  ;;  %v849_v44 = vld [vmem:[#allocation8 + $0x27] ss:$8 sm:$0x3] }
 0x105   : > { %1849 = vmatprep.subr.bf16.mxu0 %v1848_v53  ;;  %v556_v12 = vmul.f32 %v549_v55, %v542_v62  ;;  %v557_v13 = vmul.f32 %v553_v57, %v541_v61  ;;  %v714_v53 = vrot.slane %v705_v45, %v2511_v9 }
 0x106   : > { %1851 = vmatpush1.bf16.msra.mxu0 %v1850_v54 }
 0x107   : > { %v563_v63 = vpop.permute.xlu1 %562  ;;  %v561_v2 = vpop.permute.xlu0 %560 }
 0x108   : > { %v565_v5 = vsel %vm564_vm12, %v561_v2, %v563_v63  ;;  %v566_v6 = vsel %vm564_vm12, %v563_v63, %v561_v2  ;;  %v729_v2 = vld [vmem:[#allocation8 + $0x22] ss:$8 sm:$0x3] }
 0x109   : > { %v580_v14 = vmul.f32 %v573_v58, %v566_v6  ;;  %v581_v15 = vmul.f32 %v577_v59, %v565_v5 }
 0x10b   : > { %v604_v16 = vpop.permute.xlu1 %603  ;;  %v602_v17 = vpop.permute.xlu0 %601  ;;  %v1852_v18 = vpack.c.bf16 %v581_v15, %v557_v13  ;;  %v1854_v19 = vpack.c.bf16 %v580_v14, %v556_v12  ;;  %v738_v12 = vrot.slane %v729_v2, %v2511_v9  ;;  %v758_v13 = vrot.slane %v753_v3, %v2509_v8 }
 0x10c   : > { %v606_v22 = vsel %vm3020_vm13, %v602_v17, %v604_v16  ;;  %v607_v23 = vsel %vm3020_vm13, %v604_v16, %v602_v17  ;;  %vm3023_vm13 = vcmp.lt.s32.totalorder %v2507_v7, 113  ;;  %v762_v14 = vrot.slane %v753_v3, %v2511_v9 }
 0x10d   : > { %v621_v24 = vmul.f32 %v614_v10, %v606_v22  ;;  %v622_v25 = vmul.f32 %v618_v11, %v607_v23  ;;  %1853 = vmatprep.subr.bf16.mxu0 %v1852_v18  ;;  %v734_v11 = vrot.slane %v729_v2, %v2509_v8 }
 0x10e   : > { %1855 = vmatpush1.bf16.msra.mxu0 %v1854_v19 }
 0x10f   : > { %v628_v28 = vpop.permute.xlu1 %627  ;;  %v626_v29 = vpop.permute.xlu0 %625  ;;  %v1856_v30 = vpack.c.bf16 %v622_v25, %v598_v20  ;;  %v1858_v1 = vpack.c.bf16 %v621_v24, %v597_v21  ;;  %v777_v25 = vld [vmem:[#allocation8 + $0x24] ss:$8 sm:$0x3] }
 0x110   : > { %v630_v34 = vsel %vm3021_vm14, %v626_v29, %v628_v28  ;;  %v631_v35 = vsel %vm3021_vm14, %v628_v28, %v626_v29  ;;  %vm3024_vm14 = vcmp.lt.s32.totalorder %v2507_v7, 112 }
 0x111   : > { %1857 = vmatprep.subr.bf16.mxu0 %v1856_v30  ;;  %v645_v40 = vmul.f32 %v638_v0, %v630_v34  ;;  %v646_v41 = vmul.f32 %v642_v31, %v631_v35  ;;  %v786_v0 = vrot.slane %v777_v25, %v2511_v9  ;;  %v806_v31 = vrot.slane %v801_v26, %v2509_v8 }
 0x112   : > { %1859 = vmatpush1.bf16.msra.mxu0 %v1858_v1  ;;  %v782_v1 = vrot.slane %v777_v25, %v2509_v8 }
 0x113   : > { %v652_v36 = vpop.permute.xlu1 %651  ;;  %v650_v37 = vpop.permute.xlu0 %649 }
 0x114   : > { %v654_v38 = vsel %vm3022_vm15, %v650_v37, %v652_v36  ;;  %v655_v39 = vsel %vm3022_vm15, %v652_v36, %v650_v37  ;;  %vm3025_vm15 = vcmp.lt.s32.totalorder %v2507_v7, 111 }
 0x115   : > { %v669_v42 = vmul.f32 %v662_v32, %v654_v38  ;;  %v670_v43 = vmul.f32 %v666_v33, %v655_v39  ;;  %v810_v32 = vrot.slane %v801_v26, %v2511_v9 }
 0x117   : > { %v676_v46 = vpop.permute.xlu1 %675  ;;  %v674_v47 = vpop.permute.xlu0 %673  ;;  %v1860_v48 = vpack.c.bf16 %v670_v43, %v646_v41  ;;  %v1862_v49 = vpack.c.bf16 %v669_v42, %v645_v40  ;;  %v825_v43 = vld [vmem:[#allocation8 + $0x26] ss:$8 sm:$0x3] }
 0x118   : > { %v678_v54 = vsel %vm3023_vm13, %v674_v47, %v676_v46  ;;  %v679_v55 = vsel %vm3023_vm13, %v676_v46, %v674_v47  ;;  %vm3026_vm13 = vcmp.lt.s32.totalorder %v2507_v7, 110 }
 0x119   : > { %1861 = vmatprep.subr.bf16.mxu0 %v1860_v48  ;;  %v693_v60 = vmul.f32 %v686_v50, %v678_v54  ;;  %v694_v61 = vmul.f32 %v690_v51, %v679_v55  ;;  %v834_v50 = vrot.slane %v825_v43, %v2511_v9  ;;  %v854_v51 = vrot.slane %v849_v44, %v2509_v8 }
 0x11a   : > { %1863 = vmatpush1.bf16.msra.mxu0 %v1862_v49  ;;  %v830_v49 = vrot.slane %v825_v43, %v2509_v8  ;;  %v1074_v43 = vld [vmem:[#allocation8 + $0x2] ss:$8 sm:$0x3] }
 0x11b   : > { %v700_v56 = vpop.permute.xlu1 %699  ;;  %v698_v57 = vpop.permute.xlu0 %697 }
 0x11c   : > { %v702_v58 = vsel %vm3024_vm14, %v698_v57, %v700_v56  ;;  %v703_v59 = vsel %vm3024_vm14, %v700_v56, %v698_v57  ;;  %vm3027_vm14 = vcmp.lt.s32.totalorder %v2507_v7, 98 }
 0x11d   : > { %v717_v62 = vmul.f32 %v710_v52, %v702_v58  ;;  %v718_v63 = vmul.f32 %v714_v53, %v703_v59  ;;  %v858_v52 = vrot.slane %v849_v44, %v2511_v9  ;;  %v873_v53 = vld [vmem:[#allocation8 + $0x30] ss:$8 sm:$0x3]  ;;  %v1096_v44 = vld [vmem:[#allocation8 + $0x3] ss:$8 sm:$0x3] }
 0x11e   : > { %v878_v3 = vrot.slane %v873_v53, %v2509_v8 }
 0x11f   : > { %v724_v4 = vpop.permute.xlu1 %723  ;;  %v722_v5 = vpop.permute.xlu0 %721  ;;  %v1864_v6 = vpack.c.bf16 %v718_v63, %v694_v61  ;;  %v1866_v10 = vpack.c.bf16 %v717_v62, %v693_v60  ;;  %v882_v60 = vrot.slane %v873_v53, %v2511_v9 }
 0x120   : > { %v726_v15 = vsel %vm3025_vm15, %v722_v5, %v724_v4  ;;  %v727_v16 = vsel %vm3025_vm15, %v724_v4, %v722_v5  ;;  %vm3028_vm15 = vcmp.lt.s32.totalorder %v2507_v7, 97 }
 0x121   : > { %1865 = vmatprep.subr.bf16.mxu0 %v1864_v6  ;;  %v741_v21 = vmul.f32 %v734_v11, %v726_v15  ;;  %v742_v22 = vmul.f32 %v738_v12, %v727_v16  ;;  %v889_v15 = vld [vmem:[#allocation3] sm:$0xff] }
 0x122   : > { %1867 = vmatpush1.bf16.msra.mxu0 %v1866_v10 }
 0x123   : > { %v748_v17 = vpop.permute.xlu1 %747  ;;  %v746_v18 = vpop.permute.xlu0 %745 }
 0x124   : > { %v750_v19 = vsel %vm3026_vm13, %v746_v18, %v748_v17  ;;  %v751_v20 = vsel %vm3026_vm13, %v748_v17, %v746_v18  ;;  %vm821_vm13 = vcmp.lt.s32.totalorder %v2507_v7, 96 }
 0x125   : > { %v765_v23 = vmul.f32 %v758_v13, %v750_v19  ;;  %v766_v24 = vmul.f32 %v762_v14, %v751_v20 }
 0x127   : > { %v772_v27 = vpop.permute.xlu1 %771  ;;  %v770_v28 = vpop.permute.xlu0 %769  ;;  %v1868_v29 = vpack.c.bf16 %v766_v24, %v742_v22  ;;  %v1870_v30 = vpack.c.bf16 %v765_v23, %v741_v21  ;;  %v1569_v23 = vld [vmem:[#allocation6 + $0x8] sm:$0xff]  ;;  %v1620_v24 = vld [vmem:[%s2989_s3] sm:$0xff] }
 0x128   : > { %v774_v33 = vsel %vm3027_vm14, %v770_v28, %v772_v27  ;;  %v775_v34 = vsel %vm3027_vm14, %v772_v27, %v770_v28  ;;  %vm845_vm14 = vcmp.lt.s32.totalorder %v2507_v7, 95  ;;  %1825 = vmatprep.mubr.msk.f32.mxu1 %vm947_vm0, %v1569_v23  ;;  %v1030_v27 = vld [vmem:[#allocation8] ss:$8 sm:$0x3]  ;;  %vm3051_vm0 = vcmp.lt.s32.totalorder %v2507_v7, 127 }
 0x129   : > { %1869 = vmatprep.subr.bf16.mxu0 %v1868_v29  ;;  %v789_v39 = vmul.f32 %v782_v1, %v774_v33  ;;  %v790_v40 = vmul.f32 %v786_v0, %v775_v34  ;;  %v1052_v28 = vld [vmem:[#allocation8 + $0x1] ss:$8 sm:$0x3]  ;;  %v1035_v1 = vrot.slane %v1030_v27, %v2509_v8 }
 0x12a   : > { %1871 = vmatpush1.bf16.msra.mxu0 %v1870_v30  ;;  %v1057_v0 = vrot.slane %v1052_v28, %v2509_v8 }
 0x12b   : > { %v796_v35 = vpop.permute.xlu1 %795  ;;  %v794_v36 = vpop.permute.xlu0 %793 }
 0x12c   : > { %v798_v37 = vsel %vm3028_vm15, %v794_v36, %v796_v35  ;;  %v799_v38 = vsel %vm3028_vm15, %v796_v35, %v794_v36  ;;  %vm869_vm15 = vcmp.lt.s32.totalorder %v2507_v7, 94 }
 0x12d   : > { %v813_v41 = vmul.f32 %v806_v31, %v798_v37  ;;  %v814_v42 = vmul.f32 %v810_v32, %v799_v38  ;;  %v1039_v31 = vrot.slane %v1030_v27, %v2511_v9  ;;  %v1061_v32 = vrot.slane %v1052_v28, %v2511_v9  ;;  %v1184_v27 = vld [vmem:[#allocation8 + $0x7] ss:$8 sm:$0x3] }
 0x12f   : > { %v820_v45 = vpop.permute.xlu1 %819  ;;  %v818_v46 = vpop.permute.xlu0 %817  ;;  %v1872_v47 = vpack.c.bf16 %v814_v42, %v790_v40  ;;  %v1874_v48 = vpack.c.bf16 %v813_v41, %v789_v39 }
 0x130   : > { %v822_v54 = vsel %vm821_vm13, %v818_v46, %v820_v45  ;;  %v823_v55 = vsel %vm821_vm13, %v820_v45, %v818_v46 }
 0x131   : > { %1873 = vmatprep.subr.bf16.mxu0 %v1872_v47  ;;  %v837_v61 = vmul.f32 %v830_v49, %v822_v54  ;;  %v838_v62 = vmul.f32 %v834_v50, %v823_v55  ;;  %v1079_v49 = vrot.slane %v1074_v43, %v2509_v8  ;;  %v1083_v50 = vrot.slane %v1074_v43, %v2511_v9 }
 0x132   : > { %1875 = vmatpush1.bf16.msra.mxu0 %v1874_v48 }
 0x133   : > { %v844_v56 = vpop.permute.xlu1 %843  ;;  %v842_v57 = vpop.permute.xlu0 %841 }
 0x134   : > { %v846_v58 = vsel %vm845_vm14, %v842_v57, %v844_v56  ;;  %v847_v59 = vsel %vm845_vm14, %v844_v56, %v842_v57 }
 0x135   : > { %v861_v63 = vmul.f32 %v854_v51, %v846_v58  ;;  %v862_v2 = vmul.f32 %v858_v52, %v847_v59  ;;  %v1101_v51 = vrot.slane %v1096_v44, %v2509_v8  ;;  %v1105_v52 = vrot.slane %v1096_v44, %v2511_v9  ;;  %v1206_v44 = vld [vmem:[#allocation8 + $0x10] ss:$8 sm:$0x3] }
 0x137   : > { %v868_v4 = vpop.permute.xlu1 %867  ;;  %v866_v5 = vpop.permute.xlu0 %865  ;;  %v1876_v6 = vpack.c.bf16 %v862_v2, %v838_v62  ;;  %v1878_v10 = vpack.c.bf16 %v861_v63, %v837_v61  ;;  %v1118_v63 = vld [vmem:[#allocation8 + $0x4] ss:$8 sm:$0x3]  ;;  %v1140_v2 = vld [vmem:[#allocation8 + $0x5] ss:$8 sm:$0x3] }
 0x138   : > { %v870_v11 = vsel %vm869_vm15, %v866_v5, %v868_v4  ;;  %v871_v12 = vsel %vm869_vm15, %v868_v4, %v866_v5 }
 0x139   : > { %v886_v13 = vmul.f32 %v882_v60, %v871_v12  ;;  %1877 = vmatprep.subr.bf16.mxu0 %v1876_v6  ;;  %v885_v14 = vmul.f32 %v878_v3, %v870_v11  ;;  %v1127_v11 = vrot.slane %v1118_v63, %v2511_v9  ;;  %v1145_v12 = vrot.slane %v1140_v2, %v2509_v8 }
 0x13a   : > { %1879 = vmatpush1.bf16.msra.mxu0 %v1878_v10  ;;  %v1123_v10 = vrot.slane %v1118_v63, %v2509_v8 }
 0x13b   : > { %999 = vmatprep.subr.mxu0 %v886_v13  ;;  %v1149_v13 = vrot.slane %v1140_v2, %v2511_v9  ;;  %v1250_v2 = vld [vmem:[#allocation8 + $0x12] ss:$8 sm:$0x3] }
 0x13e   : > { %1000 = vmatpush1.msra.mxu0 %v885_v14 }
 0x13f   : > { %1016 = vmatmul.mubr.f32.vlgmr.msra.gmra.mrb[0].mxu0 %v889_v15 }
 0x148   : > { %v945_v16 = vpop.permute.xlu0 %944 }
 0x212   : > { %v1017_v17 = vpop.f32.mrb[0].mxu0 }
 0x213   : > { %v1018_v18 = vadd.f32 %v1017_v17, %v945_v16  ;;  %v1019_v19 = vpop.f32.mrb[1].mxu0 }
 0x214   : > { %v1020_v21 = vadd.f32 %v1019_v19, %v945_v16 }
 0x215   : > { %v2685_v20 = vmax.f32 %v1018_v18, 0.0 }
 0x216   : > { %v2691_v22 = vmax.f32 %v1020_v21, 0.0 }
 0x217   : > { %1046 = vrot.lane.b32.xlu0 %v2685_v20, %s2189_s20  ;;  %1024 = vrot.lane.b32.xlu1 %v2685_v20, %s2190_s26 }
 0x21b   : > { %1068 = vrot.lane.b32.xlu0 %v2685_v20, %s2191_s29  ;;  %1026 = vrot.lane.b32.xlu1 %v2691_v22, %s2190_s26  ;;  %s3040_s26 = smov 1  }
 0x21f   : > { %1090 = vrot.lane.b32.xlu0 %v2685_v20, %s2192_s10  ;;  %1048 = vrot.lane.b32.xlu1 %v2691_v22, %s2189_s20  ;;  %s3039_s20 = smov 2  }
 0x223   : > { %1112 = vrot.lane.b32.xlu0 %v2685_v20, %s2193_s12  ;;  %1070 = vrot.lane.b32.xlu1 %v2691_v22, %s2191_s29  ;;  %s3041_s29 = smov 127  }
 0x227   : > { %1134 = vrot.lane.b32.xlu0 %v2685_v20, %s2194_s13  ;;  %1092 = vrot.lane.b32.xlu1 %v2691_v22, %s2192_s10  ;;  %s3042_s10 = smov 126  }
 0x22b   : > { %1156 = vrot.lane.b32.xlu0 %v2685_v20, %s2195_s11  ;;  %1114 = vrot.lane.b32.xlu1 %v2691_v22, %s2193_s12  ;;  %s3043_s12 = smov 114  }
 0x22f   : > { %1178 = vrot.lane.b32.xlu0 %v2685_v20, %s2196_s15  ;;  %1136 = vrot.lane.b32.xlu1 %v2691_v22, %s2194_s13  ;;  %s3044_s13 = smov 113  }
 0x233   : > { %1200 = vrot.lane.b32.xlu0 %v2685_v20, %s2197_s17  ;;  %1158 = vrot.lane.b32.xlu1 %v2691_v22, %s2195_s11  ;;  %s3045_s11 = smov 112  }
 0x237   : > { %1222 = vrot.lane.b32.xlu0 %v2685_v20, %s2198_s18  ;;  %1180 = vrot.lane.b32.xlu1 %v2691_v22, %s2196_s15  ;;  %s3046_s15 = smov 111  }
 0x23b   : > { %1244 = vrot.lane.b32.xlu0 %v2685_v20, %s3039_s20  ;;  %1202 = vrot.lane.b32.xlu1 %v2691_v22, %s2197_s17  ;;  %s3047_s17 = smov 110  }
 0x23f   : > { %1266 = vrot.lane.b32.xlu0 %v2685_v20, %s3040_s26  ;;  %1224 = vrot.lane.b32.xlu1 %v2691_v22, %s2198_s18  ;;  %s3048_s18 = smov 98  }
 0x243   : > { %1304 = vrot.lane.b32.xlu0 %v2685_v20, %s3041_s29  ;;  %1246 = vrot.lane.b32.xlu1 %v2691_v22, %s3039_s20 }
 0x247   : > { %1326 = vrot.lane.b32.xlu0 %v2685_v20, %s3042_s10  ;;  %1268 = vrot.lane.b32.xlu1 %v2691_v22, %s3040_s26 }
 0x24b   : > { %1348 = vrot.lane.b32.xlu0 %v2685_v20, %s3043_s12  ;;  %1306 = vrot.lane.b32.xlu1 %v2691_v22, %s3041_s29  ;;  %s1831_s29 = sshll.u32 %s2271_s25, 8 }
 0x24f   : > { %1370 = vrot.lane.b32.xlu0 %v2685_v20, %s3044_s13  ;;  %1328 = vrot.lane.b32.xlu1 %v2691_v22, %s3042_s10 }
 0x253   : > { %1392 = vrot.lane.b32.xlu0 %v2685_v20, %s3045_s11  ;;  %1350 = vrot.lane.b32.xlu1 %v2691_v22, %s3043_s12 }
 0x257   : > { %1414 = vrot.lane.b32.xlu0 %v2685_v20, %s3046_s15  ;;  %1372 = vrot.lane.b32.xlu1 %v2691_v22, %s3044_s13 }
 0x25b   : > { %1436 = vrot.lane.b32.xlu0 %v2685_v20, %s3047_s17  ;;  %1394 = vrot.lane.b32.xlu1 %v2691_v22, %s3045_s11 }
 0x25f   : > { %1458 = vrot.lane.b32.xlu0 %v2685_v20, %s3048_s18  ;;  %1416 = vrot.lane.b32.xlu1 %v2691_v22, %s3046_s15  ;;  %s2944_s15 = scalar_lea.hbm %s2992_s6, %s1831_s29 }
 0x263   : > { %1480 = vrot.lane.b32.xlu0 %v2685_v20, %s3049_s14  ;;  %1438 = vrot.lane.b32.xlu1 %v2691_v22, %s3047_s17 }
 0x267   : > { %1502 = vrot.lane.b32.xlu0 %v2685_v20, %s3050_s9  ;;  %1460 = vrot.lane.b32.xlu1 %v2691_v22, %s3048_s18 }
 0x26b   : > { %1524 = vrot.lane.b32.xlu0 %v2685_v20, %s2212_s16  ;;  %1482 = vrot.lane.b32.xlu1 %v2691_v22, %s3049_s14 }
 0x26f   : > { %1546 = vrot.lane.b32.xlu0 %v2685_v20, %s2213_s28  ;;  %1504 = vrot.lane.b32.xlu1 %v2691_v22, %s3050_s9 }
 0x273   : > { %1623 = vperm.xlu0 %2025, %v1620_v24   ;;  %1526 = vrot.lane.b32.xlu1 %v2691_v22, %s2212_s16  ;;  %s283_s16 = sand.u32 1, %s2174_s22  }
 0x274   : > { %s1707_s17 = scalar_lea.sflag [#allocation5], %s283_s16 }
 0x277   : > { %1548 = vrot.lane.b32.xlu1 %v2691_v22, %s2213_s28  ;;  %s1821_s28 = sshll.u32 %s283_s16, 4 }
 0x278   : > { %s285_s10 = scalar_lea.vmem [#allocation9], %s1821_s28 }
 0x279   : > { %s1721_s12 = sshll.u32 %s285_s10, 4  ;;  %s2946_s12 = int_to_ptr.vmem [resolvable:$true] %s1721_s12 }
 0x27a   : > { %s2112_s25 = scalar_lea.vmem %s2946_s12, 256 }
 0x27b   : > { %p2113_p12 = scmp.ne.s32.totalorder %s2946_s12, %s2112_s25 }
 0x27d   : > { %p2114_p2 = pnand %p2113_p12, %p3069_p10 }
 0x27f   : > { %p2115_p3 = pneg %p2114_p2 }
 0x289   : > { %v1047_v25 = vpop.permute.xlu0 %1046  ;;  %v1025_v26 = vpop.permute.xlu1 %1024 }
 0x28d   : > { %v1069_v29 = vpop.permute.xlu0 %1068  ;;  %v1027_v30 = vpop.permute.xlu1 %1026 }
 0x28e   : > { %v1028_v33 = vsel %vm301_vm2, %v1025_v26, %v1027_v30  ;;  %v1029_v34 = vsel %vm301_vm2, %v1027_v30, %v1025_v26  ;;  %v1162_v26 = vld [vmem:[#allocation8 + $0x6] ss:$8 sm:$0x3]  ;;  %vm3053_vm2 = vcmp.lt.s32.totalorder %v2507_v7, 126 }
 0x28f   : > { %v1042_v39 = vmul.f32 %v1035_v1, %v1029_v34  ;;  %v1043_v41 = vmul.f32 %v1039_v31, %v1028_v33  ;;  %v1171_v31 = vrot.slane %v1162_v26, %v2511_v9  ;;  %v1193_v33 = vrot.slane %v1184_v27, %v2511_v9 }
 0x291   : > { %v1091_v35 = vpop.permute.xlu0 %1090  ;;  %v1049_v36 = vpop.permute.xlu1 %1048 }
 0x292   : > { %v1050_v37 = vsel %vm324_vm1, %v1047_v25, %v1049_v36  ;;  %v1051_v38 = vsel %vm324_vm1, %v1049_v36, %v1047_v25  ;;  %vm3052_vm1 = vmmov %vm3051_vm0 }
 0x293   : > { %v1064_v40 = vmul.f32 %v1057_v0, %v1051_v38  ;;  %v1065_v42 = vmul.f32 %v1061_v32, %v1050_v37  ;;  %v1167_v0 = vrot.slane %v1162_v26, %v2509_v8  ;;  %v1189_v32 = vrot.slane %v1184_v27, %v2509_v8 }
 0x295   : > { %v1113_v45 = vpop.permute.xlu0 %1112  ;;  %v1071_v46 = vpop.permute.xlu1 %1070  ;;  %v1880_v47 = vpack.c.bf16 %v1065_v42, %v1043_v41  ;;  %v1882_v48 = vpack.c.bf16 %v1064_v40, %v1042_v39 }
 0x296   : > { %v1072_v53 = vsel %vm348_vm3, %v1069_v29, %v1071_v46  ;;  %v1073_v54 = vsel %vm348_vm3, %v1071_v46, %v1069_v29  ;;  %vm3054_vm3 = vmmov %vm3053_vm2 }
 0x297   : > { %1881 = vmatprep.subr.bf16.mxu1 %v1880_v47  ;;  %v1086_v59 = vmul.f32 %v1079_v49, %v1073_v54  ;;  %v1087_v60 = vmul.f32 %v1083_v50, %v1072_v53  ;;  %v1211_v50 = vrot.slane %v1206_v44, %v2509_v8 }
 0x298   : > { %1883 = vmatpush1.bf16.msra.mxu1 %v1882_v48 }
 0x299   : > { %v1135_v55 = vpop.permute.xlu0 %1134  ;;  %v1093_v56 = vpop.permute.xlu1 %1092 }
 0x29a   : > { %v1094_v57 = vsel %vm372_vm4, %v1091_v35, %v1093_v56  ;;  %v1095_v58 = vsel %vm372_vm4, %v1093_v56, %v1091_v35  ;;  %vm3055_vm4 = vcmp.lt.s32.totalorder %v2507_v7, 114 }
 0x29b   : > { %v1108_v61 = vmul.f32 %v1101_v51, %v1095_v58  ;;  %v1109_v62 = vmul.f32 %v1105_v52, %v1094_v57  ;;  %v1215_v51 = vrot.slane %v1206_v44, %v2511_v9 }
 0x29d   : > { %v1157_v3 = vpop.permute.xlu0 %1156  ;;  %v1115_v4 = vpop.permute.xlu1 %1114  ;;  %v1884_v5 = vpack.c.bf16 %v1109_v62, %v1087_v60  ;;  %v1886_v6 = vpack.c.bf16 %v1108_v61, %v1086_v59 }
 0x29e   : > { %v1116_v14 = vsel %vm396_vm5, %v1113_v45, %v1115_v4  ;;  %v1117_v15 = vsel %vm396_vm5, %v1115_v4, %v1113_v45  ;;  %v1228_v45 = vld [vmem:[#allocation8 + $0x11] ss:$8 sm:$0x3]  ;;  %vm3056_vm5 = vmmov %vm3055_vm4 }
 0x29f   : > { %1885 = vmatprep.subr.bf16.mxu1 %v1884_v5  ;;  %v1130_v21 = vmul.f32 %v1123_v10, %v1117_v15  ;;  %v1131_v23 = vmul.f32 %v1127_v11, %v1116_v14  ;;  %v1233_v52 = vrot.slane %v1228_v45, %v2509_v8  ;;  %v1237_v53 = vrot.slane %v1228_v45, %v2511_v9  ;;  %v1288_v11 = vld [vmem:[#allocation8 + $0x14] ss:$8 sm:$0x3] }
 0x2a0   : > { %1887 = vmatpush1.bf16.msra.mxu1 %v1886_v6 }
 0x2a1   : > { %v1179_v16 = vpop.permute.xlu0 %1178  ;;  %v1137_v17 = vpop.permute.xlu1 %1136 }
 0x2a2   : > { %v1138_v18 = vsel %vm420_vm6, %v1135_v55, %v1137_v17  ;;  %v1139_v19 = vsel %vm420_vm6, %v1137_v17, %v1135_v55  ;;  %vm3057_vm6 = vcmp.lt.s32.totalorder %v2507_v7, 113 }
 0x2a3   : > { %v1152_v24 = vmul.f32 %v1145_v12, %v1139_v19  ;;  %v1153_v25 = vmul.f32 %v1149_v13, %v1138_v18  ;;  %v1255_v12 = vrot.slane %v1250_v2, %v2509_v8  ;;  %v1259_v13 = vrot.slane %v1250_v2, %v2511_v9 }
 0x2a5   : > { %v1201_v28 = vpop.permute.xlu0 %1200  ;;  %v1159_v29 = vpop.permute.xlu1 %1158  ;;  %v1888_v30 = vpack.c.bf16 %v1153_v25, %v1131_v23  ;;  %v1890_v1 = vpack.c.bf16 %v1152_v24, %v1130_v21  ;;  %v1297_v23 = vrot.slane %v1288_v11, %v2511_v9  ;;  %v1293_v24 = vrot.slane %v1288_v11, %v2509_v8 }
 0x2a6   : > { %v1160_v34 = vsel %vm444_vm7, %v1157_v3, %v1159_v29  ;;  %v1161_v35 = vsel %vm444_vm7, %v1159_v29, %v1157_v3  ;;  %v1272_v3 = vld [vmem:[#allocation8 + $0x13] ss:$8 sm:$0x3]  ;;  %vm3058_vm7 = vmmov %vm3057_vm6 }
 0x2a7   : > { %1889 = vmatprep.subr.bf16.mxu1 %v1888_v30  ;;  %v1174_v40 = vmul.f32 %v1167_v0, %v1161_v35  ;;  %v1175_v41 = vmul.f32 %v1171_v31, %v1160_v34  ;;  %v1277_v14 = vrot.slane %v1272_v3, %v2509_v8  ;;  %v1281_v15 = vrot.slane %v1272_v3, %v2511_v9 }
 0x2a8   : > { %1891 = vmatpush1.bf16.msra.mxu1 %v1890_v1 }
 0x2a9   : > { %v1223_v36 = vpop.permute.xlu0 %1222  ;;  %v1181_v37 = vpop.permute.xlu1 %1180 }
 0x2aa   : > { %v1182_v38 = vsel %vm468_vm8, %v1179_v16, %v1181_v37  ;;  %v1183_v39 = vsel %vm468_vm8, %v1181_v37, %v1179_v16  ;;  %v1310_v16 = vld [vmem:[#allocation8 + $0x15] ss:$8 sm:$0x3]  ;;  %vm3059_vm8 = vcmp.lt.s32.totalorder %v2507_v7, 112 }
 0x2ab   : > { %v1196_v42 = vmul.f32 %v1189_v32, %v1183_v39  ;;  %v1197_v43 = vmul.f32 %v1193_v33, %v1182_v38  ;;  %v1315_v27 = vrot.slane %v1310_v16, %v2509_v8  ;;  %v1301_v39 = vmul.f32 %v1297_v23, %v2691_v22  ;;  %v1442_v23 = vld [vmem:[#allocation8 + $0x23] ss:$8 sm:$0x3] }
 0x2ad   : > { %v1245_v46 = vpop.permute.xlu0 %1244  ;;  %v1203_v47 = vpop.permute.xlu1 %1202  ;;  %v1892_v48 = vpack.c.bf16 %v1197_v43, %v1175_v41  ;;  %v1894_v49 = vpack.c.bf16 %v1196_v42, %v1174_v40  ;;  %v1300_v40 = vmul.f32 %v1293_v24, %v2685_v20  ;;  %v1332_v41 = vld [vmem:[#allocation8 + $0x16] ss:$8 sm:$0x3]  ;;  %v1354_v42 = vld [vmem:[#allocation8 + $0x17] ss:$8 sm:$0x3] }
 0x2ae   : > { %v1204_v54 = vsel %vm492_vm9, %v1201_v28, %v1203_v47  ;;  %v1205_v55 = vsel %vm492_vm9, %v1203_v47, %v1201_v28  ;;  %v1319_v28 = vrot.slane %v1310_v16, %v2511_v9  ;;  %v1337_v47 = vrot.slane %v1332_v41, %v2509_v8  ;;  %vm3060_vm9 = vmmov %vm3059_vm8 }
 0x2af   : > { %1893 = vmatprep.subr.bf16.mxu1 %v1892_v48  ;;  %v1218_v60 = vmul.f32 %v1211_v50, %v1205_v55  ;;  %v1219_v61 = vmul.f32 %v1215_v51, %v1204_v54  ;;  %v1341_v48 = vrot.slane %v1332_v41, %v2511_v9  ;;  %v1363_v50 = vrot.slane %v1354_v42, %v2511_v9  ;;  %v1486_v41 = vld [vmem:[#allocation8 + $0x25] ss:$8 sm:$0x3] }
 0x2b0   : > { %1895 = vmatpush1.bf16.msra.mxu1 %v1894_v49  ;;  %v1359_v49 = vrot.slane %v1354_v42, %v2509_v8 }
 0x2b1   : > { %v1267_v56 = vpop.permute.xlu0 %1266  ;;  %v1225_v57 = vpop.permute.xlu1 %1224 }
 0x2b2   : > { %v1226_v58 = vsel %vm516_vm10, %v1223_v36, %v1225_v57  ;;  %v1227_v59 = vsel %vm516_vm10, %v1225_v57, %v1223_v36  ;;  %vm3061_vm10 = vcmp.lt.s32.totalorder %v2507_v7, 111 }
 0x2b3   : > { %v1240_v62 = vmul.f32 %v1233_v52, %v1227_v59  ;;  %v1241_v63 = vmul.f32 %v1237_v53, %v1226_v58  ;;  %v1376_v59 = vld [vmem:[#allocation8 + $0x20] ss:$8 sm:$0x3] }
 0x2b4   : > { %v1381_v3 = vrot.slane %v1376_v59, %v2509_v8 }
 0x2b5   : > { %v1305_v4 = vpop.permute.xlu0 %1304  ;;  %v1247_v5 = vpop.permute.xlu1 %1246  ;;  %v1896_v6 = vpack.c.bf16 %v1241_v63, %v1219_v61  ;;  %v1898_v10 = vpack.c.bf16 %v1240_v62, %v1218_v60  ;;  %v1398_v60 = vld [vmem:[#allocation8 + $0x21] ss:$8 sm:$0x3] }
 0x2b6   : > { %v1248_v17 = vsel %vm540_vm11, %v1245_v46, %v1247_v5  ;;  %v1249_v18 = vsel %vm540_vm11, %v1247_v5, %v1245_v46  ;;  %v1403_v5 = vrot.slane %v1398_v60, %v2509_v8  ;;  %vm3062_vm11 = vmmov %vm3061_vm10 }
 0x2b7   : > { %1897 = vmatprep.subr.bf16.mxu1 %v1896_v6  ;;  %v1262_v29 = vmul.f32 %v1255_v12, %v1249_v18  ;;  %v1263_v30 = vmul.f32 %v1259_v13, %v1248_v17  ;;  %v1407_v6 = vrot.slane %v1398_v60, %v2511_v9 }
 0x2b8   : > { %1899 = vmatpush1.bf16.msra.mxu1 %v1898_v10 }
 0x2b9   : > { %v1327_v19 = vpop.permute.xlu0 %1326  ;;  %v1269_v21 = vpop.permute.xlu1 %1268 }
 0x2ba   : > { %v1270_v25 = vsel %vm564_vm12, %v1267_v56, %v1269_v21  ;;  %v1271_v26 = vsel %vm564_vm12, %v1269_v21, %v1267_v56  ;;  %v1420_v21 = vld [vmem:[#allocation8 + $0x22] ss:$8 sm:$0x3]  ;;  %vm3063_vm12 = vcmp.lt.s32.totalorder %v2507_v7, 110 }
 0x2bb   : > { %v1284_v1 = vmul.f32 %v1277_v14, %v1271_v26  ;;  %v1285_v0 = vmul.f32 %v1281_v15, %v1270_v25 }
 0x2bd   : > { %v1349_v31 = vpop.permute.xlu0 %1348  ;;  %v1307_v32 = vpop.permute.xlu1 %1306  ;;  %v1900_v33 = vpack.c.bf16 %v1285_v0, %v1263_v30  ;;  %v1902_v34 = vpack.c.bf16 %v1284_v1, %v1262_v29  ;;  %v1429_v29 = vrot.slane %v1420_v21, %v2511_v9  ;;  %v1447_v30 = vrot.slane %v1442_v23, %v2509_v8 }
 0x2be   : > { %v1308_v35 = vsel %vm3051_vm0, %v1305_v4, %v1307_v32  ;;  %v1309_v36 = vsel %vm3052_vm1, %v1307_v32, %v1305_v4  ;;  %v1385_v4 = vrot.slane %v1376_v59, %v2511_v9  ;;  %v1451_v1 = vrot.slane %v1442_v23, %v2511_v9  ;;  %vm3064_vm0 = vmmov %vm3063_vm12 }
 0x2bf   : > { %v1322_v37 = vmul.f32 %v1315_v27, %v1308_v35  ;;  %v1323_v38 = vmul.f32 %v1319_v28, %v1309_v36  ;;  %1901 = vmatprep.subr.bf16.mxu1 %v1900_v33  ;;  %v1425_v28 = vrot.slane %v1420_v21, %v2509_v8  ;;  %vm3065_vm1 = vcmp.lt.s32.totalorder %v2507_v7, 98 }
 0x2c0   : > { %1903 = vmatpush1.bf16.msra.mxu1 %v1902_v34 }
 0x2c1   : > { %v1371_v43 = vpop.permute.xlu0 %1370  ;;  %v1329_v44 = vpop.permute.xlu1 %1328  ;;  %v1904_v45 = vpack.c.bf16 %v1323_v38, %v1301_v39  ;;  %v1906_v46 = vpack.c.bf16 %v1322_v37, %v1300_v40  ;;  %v1464_v40 = vld [vmem:[#allocation8 + $0x24] ss:$8 sm:$0x3] }
 0x2c2   : > { %v1330_v22 = vsel %vm3053_vm2, %v1327_v19, %v1329_v44  ;;  %v1331_v20 = vsel %vm3054_vm3, %v1329_v44, %v1327_v19  ;;  %vm3066_vm2 = vmmov %vm3065_vm1  ;;  %vm3067_vm3 = vcmp.lt.s32.totalorder %v2507_v7, 97  ;;  %v2026_v7 = vld [vmem:[%s2399_s19] sm:$0xff] }
 0x2c3   : > { %1905 = vmatprep.subr.bf16.mxu1 %v1904_v45  ;;  %v1344_v55 = vmul.f32 %v1337_v47, %v1330_v22  ;;  %v1345_v56 = vmul.f32 %v1341_v48, %v1331_v20  ;;  %v1469_v45 = vrot.slane %v1464_v40, %v2509_v8  ;;  %v1491_v47 = vrot.slane %v1486_v41, %v2509_v8 }
 0x2c4   : > { %1907 = vmatpush1.bf16.msra.mxu1 %v1906_v46  ;;  %v1473_v46 = vrot.slane %v1464_v40, %v2511_v9  ;;  %v1495_v48 = vrot.slane %v1486_v41, %v2511_v9 }
 0x2c5   : > { %v1393_v51 = vpop.permute.xlu0 %1392  ;;  %v1351_v52 = vpop.permute.xlu1 %1350 }
 0x2c6   : > { %v1352_v53 = vsel %vm3055_vm4, %v1349_v31, %v1351_v52  ;;  %v1353_v54 = vsel %vm3056_vm5, %v1351_v52, %v1349_v31  ;;  %vm3068_vm4 = vmmov %vm3067_vm3 }
 0x2c7   : > { %v1366_v57 = vmul.f32 %v1359_v49, %v1352_v53  ;;  %v1367_v58 = vmul.f32 %v1363_v50, %v1353_v54 }
 0x2c9   : > { %v1415_v61 = vpop.permute.xlu0 %1414  ;;  %v1373_v62 = vpop.permute.xlu1 %1372  ;;  %v1908_v63 = vpack.c.bf16 %v1367_v58, %v1345_v56  ;;  %v1910_v2 = vpack.c.bf16 %v1366_v57, %v1344_v55  ;;  %v1508_v57 = vld [vmem:[#allocation8 + $0x26] ss:$8 sm:$0x3]  ;;  %v1530_v58 = vld [vmem:[#allocation8 + $0x27] ss:$8 sm:$0x3] }
 0x2ca   : > { %v1374_v10 = vsel %vm3057_vm6, %v1371_v43, %v1373_v62  ;;  %v1375_v11 = vsel %vm3058_vm7, %v1373_v62, %v1371_v43 }
 0x2cb   : > { %1909 = vmatprep.subr.bf16.mxu1 %v1908_v63  ;;  %v1388_v16 = vmul.f32 %v1381_v3, %v1374_v10  ;;  %v1389_v17 = vmul.f32 %v1385_v4, %v1375_v11  ;;  %v1513_v63 = vrot.slane %v1508_v57, %v2509_v8  ;;  %v1535_v3 = vrot.slane %v1530_v58, %v2509_v8 }
 0x2cc   : > { %1911 = vmatpush1.bf16.msra.mxu1 %v1910_v2  ;;  %v1517_v2 = vrot.slane %v1508_v57, %v2511_v9  ;;  %v1539_v4 = vrot.slane %v1530_v58, %v2511_v9 }
 0x2cd   : > { %v1437_v12 = vpop.permute.xlu0 %1436  ;;  %v1395_v13 = vpop.permute.xlu1 %1394 }
 0x2ce   : > { %v1396_v14 = vsel %vm3059_vm8, %v1393_v51, %v1395_v13  ;;  %v1397_v15 = vsel %vm3060_vm9, %v1395_v13, %v1393_v51 }
 0x2cf   : > { %v1410_v18 = vmul.f32 %v1403_v5, %v1396_v14  ;;  %v1411_v19 = vmul.f32 %v1407_v6, %v1397_v15  ;;  %v1552_v5 = vld [vmem:[#allocation8 + $0x30] ss:$8 sm:$0x3] }
 0x2d0   : > { %v1561_v14 = vrot.slane %v1552_v5, %v2511_v9 }
 0x2d1   : > { %v1459_v24 = vpop.permute.xlu0 %1458  ;;  %v1417_v25 = vpop.permute.xlu1 %1416  ;;  %v1912_v26 = vpack.c.bf16 %v1411_v19, %v1389_v17  ;;  %v1914_v27 = vpack.c.bf16 %v1410_v18, %v1388_v16 }
 0x2d2   : > { %v1418_v0 = vsel %vm3061_vm10, %v1415_v61, %v1417_v25  ;;  %v1419_v31 = vsel %vm3062_vm11, %v1417_v25, %v1415_v61  ;;  %v1557_v25 = vrot.slane %v1552_v5, %v2509_v8 }
 0x2d3   : > { %1913 = vmatprep.subr.bf16.mxu1 %v1912_v26  ;;  %v1432_v35 = vmul.f32 %v1425_v28, %v1418_v0  ;;  %v1433_v36 = vmul.f32 %v1429_v29, %v1419_v31  ;;  %v1568_v29 = vld [vmem:[#allocation6] sm:$0xff] }
 0x2d4   : > { %1915 = vmatpush1.bf16.msra.mxu1 %v1914_v27 }
 0x2d5   : > { %v1439_v32 = vpop.permute.xlu1 %1438  ;;  %v1481_v37 = vpop.permute.xlu0 %1480 }
 0x2d6   : > { %v1440_v33 = vsel %vm3063_vm12, %v1437_v12, %v1439_v32  ;;  %v1441_v34 = vsel %vm3064_vm0, %v1439_v32, %v1437_v12 }
 0x2d7   : > { %v1454_v38 = vmul.f32 %v1447_v30, %v1440_v33  ;;  %v1455_v39 = vmul.f32 %v1451_v1, %v1441_v34  ;;  %v2027_v33 = vld [vmem:[%s2399_s19 + $0x8] sm:$0xff]  ;;  %s2214_s19 = smov [#allocation9]  }
 0x2d8   : > { %s2116_s18 = sshll.u32 %s2214_s19, 4  ;;  %s2117_s18 = int_to_ptr.vmem [resolvable:$false] %s2116_s18 }
 0x2d9   : > { %v1461_v42 = vpop.permute.xlu1 %1460  ;;  %v1916_v43 = vpack.c.bf16 %v1455_v39, %v1433_v36  ;;  %v1918_v44 = vpack.c.bf16 %v1454_v38, %v1432_v35  ;;  %v1503_v22 = vpop.permute.xlu0 %1502  ;;  %s2118_s14 = scalar_lea.vmem %s2117_s18, 512  ;;  %p2119_p4 = scmp.lt.s32.totalorder %s2946_s12, %s2117_s18 }
 0x2da   : > { %v1462_v49 = vsel %vm3065_vm1, %v1459_v24, %v1461_v42  ;;  %v1463_v50 = vsel %vm3066_vm2, %v1461_v42, %v1459_v24  ;;  %p2120_p7 = scmp.lt.s32.totalorder %s2118_s14, %s2112_s25 }
 0x2db   : > { %1917 = vmatprep.subr.bf16.mxu1 %v1916_v43  ;;  %v1476_v53 = vmul.f32 %v1469_v45, %v1462_v49  ;;  %v1477_v54 = vmul.f32 %v1473_v46, %v1463_v50 }
 0x2dc   : > { %1919 = vmatpush1.bf16.msra.mxu1 %v1918_v44  ;;  %p2121_p8 = por %p2120_p7, %p2119_p4 }
 0x2dd   : > { %v1483_v20 = vpop.permute.xlu1 %1482  ;;  %v1525_v62 = vpop.permute.xlu0 %1524 }
 0x2de   : > { %v1484_v51 = vsel %vm3067_vm3, %v1481_v37, %v1483_v20  ;;  %v1485_v52 = vsel %vm3068_vm4, %v1483_v20, %v1481_v37  ;;  %p2122_p11 = pnand %p2121_p8, %p2115_p3 }
 0x2df   : > { %v1498_v55 = vmul.f32 %v1491_v47, %v1484_v51  ;;  %v1499_v56 = vmul.f32 %v1495_v48, %v1485_v52 }
 0x2e1   : > { %v1505_v59 = vpop.permute.xlu1 %1504  ;;  %v1920_v60 = vpack.c.bf16 %v1499_v56, %v1477_v54  ;;  %v1922_v61 = vpack.c.bf16 %v1498_v55, %v1476_v53  ;;  %v1547_v19 = vpop.permute.xlu0 %1546 }
 0x2e2   : > { %v1506_v6 = vsel %vm821_vm13, %v1503_v22, %v1505_v59  ;;  %v1507_v10 = vsel %vm821_vm13, %v1505_v59, %v1503_v22 }
 0x2e3   : > { %1921 = vmatprep.subr.bf16.mxu1 %v1920_v60  ;;  %v1520_v15 = vmul.f32 %v1513_v63, %v1506_v6  ;;  %v1521_v16 = vmul.f32 %v1517_v2, %v1507_v10 }
 0x2e4   : > { %1923 = vmatpush1.bf16.msra.mxu1 %v1922_v61 }
 0x2e5   : > { %v1527_v11 = vpop.permute.xlu1 %1526 }
 0x2e6   : > { %v1528_v12 = vsel %vm845_vm14, %v1525_v62, %v1527_v11  ;;  %v1529_v13 = vsel %vm845_vm14, %v1527_v11, %v1525_v62 }
 0x2e7   : > { %v1542_v17 = vmul.f32 %v1535_v3, %v1528_v12  ;;  %v1543_v18 = vmul.f32 %v1539_v4, %v1529_v13 }
 0x2e9   : > { %v1549_v21 = vpop.permute.xlu1 %1548  ;;  %v1924_v23 = vpack.c.bf16 %v1543_v18, %v1521_v16  ;;  %v1926_v24 = vpack.c.bf16 %v1542_v17, %v1520_v15 }
 0x2ea   : > { %v1551_v26 = vsel %vm869_vm15, %v1549_v21, %v1547_v19  ;;  %v1550_v27 = vsel %vm869_vm15, %v1547_v19, %v1549_v21 }
 0x2eb   : > { %v1565_v28 = vmul.f32 %v1561_v14, %v1551_v26  ;;  %1925 = vmatprep.subr.bf16.mxu1 %v1924_v23  ;;  %v1564_v9 = vmul.f32 %v1557_v25, %v1550_v27 }
 0x2ec   : > { %1927 = vmatpush1.bf16.msra.mxu1 %v1926_v24 }
 0x2ed   : > { %1677 = vmatprep.subr.mxu1 %v1565_v28 }
 0x2f0   : > { %1678 = vmatpush1.msra.mxu1 %v1564_v9 }
 0x2f1   : > { %1694 = vmatmul.mubr.f32.vlgmr.msra.gmra.mrb[0].mxu1 %v1568_v29 }
 0x2f2   : > { %v1624_v8 = vpop.permute.xlu0 %1623 }
 0x3c4   : > { %v1695_v30 = vpop.f32.mrb[0].mxu1 }
 0x3c5   : > { %v1696_v1 = vadd.f32 %v1695_v30, %v1624_v8  ;;  %v1697_v0 = vpop.f32.mrb[1].mxu1 }
 0x3c6   : > { %v1698_v31 = vadd.f32 %v1697_v0, %v1624_v8 }
 0x3c7   : > { %v1700_v32 = vadd.f32 %v2026_v7, %v1696_v1 }
 0x3c8   : > { %v1701_v34 = vadd.f32 %v2027_v33, %v1698_v31 }
 0x3c9   : > { %v1702_v35 = vmax.f32 %v1700_v32, 0.0 }
 0x3ca   : > { %v1703_v36 = vmax.f32 %v1701_v34, 0.0 }
 0x3cb   : > { %1704 = vst [vmem:[%s285_s10] sm:$0xff] %v1702_v35 }
 0x3cc   : > { %1705 = vst [vmem:[%s285_s10 + $0x8] sm:$0xff] %v1703_v36 }
 0x3cd   : > { %2125 = shalt.err (!%p2122_p11)
}
 0x3ce   : > { %s2126_s9 = scalar_lea.hbm %s2944_s15, 256  ;;  %s2130_s16 = scalar_lea.hbm %s2992_s6, 512 }
 0x3cf   : > { %p2127_p13 = scmp.ne.s32.totalorder %s2944_s15, %s2126_s9  ;;  %p2131_p6 = scmp.lt.u32.totalorder %s2944_s15, %s2992_s6 }
 0x3d0   : > { %p2132_p5 = scmp.lt.u32.totalorder %s2130_s16, %s2126_s9  ;;  %p2134_p12 = scmp.lt.u32.totalorder %s2126_s9, %s2944_s15 }
 0x3d1   : > { %p2128_p0 = pnand %p2127_p13, %p3069_p10 }
 0x3d2   : > { %p2133_p9 = por %p2132_p5, %p2131_p6 }
 0x3d3   : > { %p2129_p1 = pneg %p2128_p0 }
 0x3d4   : > { %p2135_p2 = por %p2134_p12, %p2133_p9 }
 0x3d6   : > { %p2136_p3 = pnand %p2135_p2, %p2129_p1 }
 0x3d8   : > { %2139 = shalt.err (!%p2136_p3)
}
 0x3d9   : > { %1940 = dma.vmem_to_hbm [thread:$0]  (%p3069_p10), %s2946_s12, 256, %s2944_s15, %s1707_s17  }
 0x3da PF: > { %p1962_p4 = scmp.ge.s32.totalorder %s2182_s24, 2  ;;  %s1733_s10 = sand.u32 1, %s2170_s21  }
 0x3db   : > { %p3070_p7 = scmp.ne.s32.totalorder %s3030_s8, 0  ;;  %s1734_s13 = scalar_lea.sflag [#allocation5], %s1733_s10 }
 0x3dd   : > { %p1953_p8 = pnand %p1962_p4, %p3070_p7 }
 0x3df   : > { %2165 = dma.done.wait (!%p1953_p8), %s1734_s13, 256  }
 0x3e0   : > { %2167 = vsyncadd (!%p1953_p8), %s1734_s13, 4294967040  ;;  %p18_p11 = scmp.ge.s32.totalorder %s2275_s27, 4   ;;  %s3071_s21 = smov %s2174_s22 }
 0x3e1   : > { %s3072_s22 = smov %s2178_s23  ;;  %s3073_s23 = smov %s2286_s30 }
 0x3e2   : > { %s3074_s24 = smov %s2275_s27  ;;  %20 = sbr.rel (!%p18_p11) target bundleno = 5 (0x5), region = 116 }
 0x3e9   :  { %1739 = vsyncpa [#allocation4], 1 }
 0x3ea   :  { %1741 = vsyncpa [#allocation4 + $0x1], 1 }
 0x3eb   :  { %1742 = vsyncpa [#allocation7], 1 }
 0x3ec   :  { %1743 = vsyncpa [#allocation5], 1 }
 0x3ed   :  { %1745 = vsyncpa [#allocation5 + $0x1], 1 }

</bundles_post_ra>
